<compile_context>
chip_gen: v7x
topology: tpu7x:2x2x1
jax: 0.10.0
libtpu: 0.0.40
codegen_flags: <defaults>
</compile_context>

<pallas_src>
import jax
import jax.numpy as jnp
from jax.experimental import pallas as pl
from jax.experimental.pallas import tpu as pltpu


def _transup_kernel(x_ref, wa_ref, s_ref, b_ref, o_ref):
    """One (batch, row-strip) grid step.

    x_ref : (Cin, h_tile, W)       NCHW input strip (batch dim squeezed)
    wa_ref: (4, Cout, Cin)         wa[kh*2+kw][co, ci] = weight[ci, co, kh, kw]
    s_ref : (2, W, 2W)             0/1 lane-spread: s[kw][w, 2w+kw] = 1
    b_ref : (Cout, 1)              bias column
    o_ref : (Cout, 2*h_tile, 2W)   NCHW output strip (batch dim squeezed)
    """
    xblk = x_ref[...]                # (Cin, h_tile, W)
    wa = wa_ref[...]                 # (4, Cout, Cin)
    s = s_ref[...]                   # (2, W, 2W)
    bcol = b_ref[...]                # (Cout, 1)
    h_tile = xblk.shape[1]
    f32 = jnp.float32

    for h in range(h_tile):          # static unroll; h_tile capped in wrapper
        xh = xblk[:, h, :]                                           # (Cin, W)
        # Spread input columns onto even / odd output lanes (kw interleave).
        xs0 = jnp.dot(xh, s[0], preferred_element_type=f32)          # (Cin, 2W)
        xs1 = jnp.dot(xh, s[1], preferred_element_type=f32)          # (Cin, 2W)
        # Channel contraction per kernel tap; output rows 2h (kh=0), 2h+1 (kh=1).
        r0 = (jnp.dot(wa[0], xs0, preferred_element_type=f32)
              + jnp.dot(wa[1], xs1, preferred_element_type=f32) + bcol)
        r1 = (jnp.dot(wa[2], xs0, preferred_element_type=f32)
              + jnp.dot(wa[3], xs1, preferred_element_type=f32) + bcol)
        o_ref[:, pl.ds(2 * h, 1), :] = r0[:, None, :].astype(o_ref.dtype)
        o_ref[:, pl.ds(2 * h + 1, 1), :] = r1[:, None, :].astype(o_ref.dtype)


def _pick_h_tile(H, W, Cin, Cout, itemsize, budget_bytes=6 << 20, max_unroll=64):
    """Largest row-strip (multiple of 8, divides H) fitting the VMEM budget."""
    if H % 8 != 0:
        # Block equal to the full dim is always legal; H not divisible by 8 is
        # the only case where we cannot tile the sublane dim.
        return H
    w_pad = ((W + 127) // 128) * 128            # lane padding of the x strip
    w2_pad = ((2 * W + 127) // 128) * 128       # lane padding of the out strip

    def footprint(ht):  # double-buffered input strip + output strip
        return 2 * itemsize * ht * (Cin * w_pad + 2 * Cout * w2_pad)

    h_tile = 8
    start = min(H, max_unroll)
    for t in range(start, 7, -8):
        if H % t == 0 and footprint(t) <= budget_bytes:
            h_tile = t
            break
    # Keep >= 2 row-strips when possible so the grid always has multiple steps
    # to pipeline and to shard across TensorCores (v7x megacore).
    if H // h_tile < 2 and h_tile % 16 == 0:
        h_tile //= 2
    return h_tile


def transition_up(x, weight, bias):
    """ConvTranspose2d(kernel=2, stride=2, padding=0) forward, PyTorch semantics.

    x:      (B, Cin, H, W)      NCHW
    weight: (Cin, Cout, 2, 2)   PyTorch ConvTranspose2d layout
    bias:   (Cout,)
    returns (B, Cout, 2H, 2W)   NCHW
    """
    B, Cin, H, W = x.shape
    Cout = weight.shape[1]
    dtype = x.dtype
    itemsize = jnp.dtype(dtype).itemsize

    h_tile = _pick_h_tile(H, W, Cin, Cout, itemsize)
    n_strips = H // h_tile
    grid = (B, n_strips)

    # Repack weight: (Cin, Cout, kh, kw) -> (kh, kw, Cout, Cin) -> (4, Cout, Cin)
    wa = jnp.transpose(weight, (2, 3, 1, 0)).reshape(4, Cout, Cin).astype(dtype)
    b_col = bias.reshape(Cout, 1).astype(dtype)

    # Constant 0/1 lane-spread matrices: sm[kw][w, 2w+kw] = 1.
    row = jnp.arange(W)[:, None]
    col = jnp.arange(2 * W)[None, :]
    sm = jnp.stack([(col == 2 * row).astype(dtype),
                    (col == 2 * row + 1).astype(dtype)], axis=0)     # (2, W, 2W)

    flops = 2 * B * H * W * Cin * 4 * Cout
    bytes_accessed = itemsize * (B * Cin * H * W            # read x once
                                 + B * Cout * 4 * H * W     # write out once
                                 + 4 * Cout * Cin + 2 * W * 2 * W + Cout)

    out = pl.pallas_call(
        _transup_kernel,
        out_shape=jax.ShapeDtypeStruct((B, Cout, 2 * H, 2 * W), dtype),
        grid_spec=pltpu.PrefetchScalarGridSpec(
            num_scalar_prefetch=0,
            grid=grid,
            in_specs=[
                # NCHW input strip: (1, Cin, h_tile, W), batch dim squeezed.
                pl.BlockSpec((None, Cin, h_tile, W),
                             lambda b, hb: (b, 0, hb, 0)),
                pl.BlockSpec((4, Cout, Cin), lambda b, hb: (0, 0, 0)),
                pl.BlockSpec((2, W, 2 * W), lambda b, hb: (0, 0, 0)),
                pl.BlockSpec((Cout, 1), lambda b, hb: (0, 0)),
            ],
            # NCHW output strip: rows [2*hb*h_tile, 2*(hb+1)*h_tile).
            out_specs=pl.BlockSpec((None, Cout, 2 * h_tile, 2 * W),
                                   lambda b, hb: (b, 0, hb, 0)),
        ),
        compiler_params=pltpu.CompilerParams(
            dimension_semantics=("parallel", "parallel")),
        cost_estimate=pl.CostEstimate(flops=flops, transcendentals=0,
                                      bytes_accessed=bytes_accessed),
    )(x, wa, sm, b_col)
    return out


def _reference(x, weight, bias):
    # Pure-JAX reference of the same ConvTranspose2d semantics.
    B, Cin, H, W = x.shape
    Cout = weight.shape[1]
    y = jnp.einsum("bihw,iokl->bohklw", x, weight)  # (B, Cout, H, kh, kw, W)
    y = jnp.transpose(y, (0, 1, 2, 3, 5, 4)).reshape(B, Cout, 2 * H, 2 * W)
    return y + bias[None, :, None, None]


if __name__ == "__main__":
    key = jax.random.PRNGKey(0)
    kx, kw_, kb = jax.random.split(key, 3)

    B, Cin, Cout, H, W = 2, 4, 8, 16, 16
    x = jax.random.normal(kx, (B, Cin, H, W), dtype=jnp.float32)
    weight = jax.random.normal(kw_, (Cin, Cout, 2, 2), dtype=jnp.float32) * 0.1
    bias = jax.random.normal(kb, (Cout,), dtype=jnp.float32) * 0.1

    out = jax.block_until_ready(transition_up(x, weight, bias))
    ref = jax.block_until_ready(_reference(x, weight, bias))

    assert out.shape == (B, Cout, 2 * H, 2 * W), out.shape
    max_err = float(jnp.max(jnp.abs(out - ref)))
    # f32 MXU accumulation tolerance.
    assert max_err < 1e-4, max_err
    print("KERNEL_OK")
</pallas_src>

<mosaic_0001>
module attributes {stable_mosaic.version = 11 : i64} {
  func.func @_transup_kernel(%arg0: i32, %arg1: i32, %arg2: memref<1x4x8x16xf32, #tpu.memory_space<vmem>>, %arg3: memref<4x8x4xf32, #tpu.memory_space<vmem>>, %arg4: memref<2x16x32xf32, #tpu.memory_space<vmem>>, %arg5: memref<8x1xf32, #tpu.memory_space<vmem>>, %arg6: memref<1x8x16x32xf32, #tpu.memory_space<vmem>>) attributes {dimension_semantics = [#tpu.dimension_semantics<parallel>, #tpu.dimension_semantics<parallel>], iteration_bounds = array<i64: 2, 2>, scalar_prefetch = 0 : i64, scratch_operands = 0 : i64, tpu.core_type = #tpu.core_type<tc>, window_params = [{transform_indices = @transform_0, window_bounds = array<i64: 1, 4, 8, 16>}, {pipeline_mode = #tpu.pipeline_mode<synchronous>, transform_indices = @transform_1, window_bounds = array<i64: 4, 8, 4>}, {pipeline_mode = #tpu.pipeline_mode<synchronous>, transform_indices = @transform_2, window_bounds = array<i64: 2, 16, 32>}, {pipeline_mode = #tpu.pipeline_mode<synchronous>, transform_indices = @transform_3, window_bounds = array<i64: 8, 1>}, {transform_indices = @transform_4, window_bounds = array<i64: 1, 8, 16, 32>}]} {
    %c0 = arith.constant 0 : index
    %c0_0 = arith.constant 0 : index
    %c0_1 = arith.constant 0 : index
    %c0_2 = arith.constant 0 : index
    %0 = vector.load %arg2[%c0, %c0_0, %c0_1, %c0_2] : memref<1x4x8x16xf32, #tpu.memory_space<vmem>>, vector<1x4x8x16xf32>
    %1 = vector.shape_cast %0 : vector<1x4x8x16xf32> to vector<4x8x16xf32>
    %c0_3 = arith.constant 0 : index
    %c0_4 = arith.constant 0 : index
    %c0_5 = arith.constant 0 : index
    %2 = vector.load %arg3[%c0_3, %c0_4, %c0_5] : memref<4x8x4xf32, #tpu.memory_space<vmem>>, vector<4x8x4xf32>
    %c0_6 = arith.constant 0 : index
    %c0_7 = arith.constant 0 : index
    %c0_8 = arith.constant 0 : index
    %3 = vector.load %arg4[%c0_6, %c0_7, %c0_8] : memref<2x16x32xf32, #tpu.memory_space<vmem>>, vector<2x16x32xf32>
    %c0_9 = arith.constant 0 : index
    %c0_10 = arith.constant 0 : index
    %4 = vector.load %arg5[%c0_9, %c0_10] : memref<8x1xf32, #tpu.memory_space<vmem>>, vector<8x1xf32>
    %5 = vector.extract_strided_slice %1 {offsets = [0, 0, 0], sizes = [4, 1, 16], strides = [1, 1, 1]} : vector<4x8x16xf32> to vector<4x1x16xf32>
    %6 = vector.shape_cast %5 : vector<4x1x16xf32> to vector<4x16xf32>
    %7 = vector.extract_strided_slice %3 {offsets = [0, 0, 0], sizes = [1, 16, 32], strides = [1, 1, 1]} : vector<2x16x32xf32> to vector<1x16x32xf32>
    %8 = vector.shape_cast %7 : vector<1x16x32xf32> to vector<16x32xf32>
    %cst = arith.constant dense<0.000000e+00> : vector<4x32xf32>
    %9 = tpu.matmul %6, %8, %cst {dimension_numbers = #tpu.dot_dimension_numbers<[1], [0], [0], [1], [0, 0, 1, 1], [], []>} : vector<4x16xf32>, vector<16x32xf32>, vector<4x32xf32> -> vector<4x32xf32>
    %10 = vector.extract_strided_slice %3 {offsets = [1, 0, 0], sizes = [1, 16, 32], strides = [1, 1, 1]} : vector<2x16x32xf32> to vector<1x16x32xf32>
    %11 = vector.shape_cast %10 : vector<1x16x32xf32> to vector<16x32xf32>
    %cst_11 = arith.constant dense<0.000000e+00> : vector<4x32xf32>
    %12 = tpu.matmul %6, %11, %cst_11 {dimension_numbers = #tpu.dot_dimension_numbers<[1], [0], [0], [1], [0, 0, 1, 1], [], []>} : vector<4x16xf32>, vector<16x32xf32>, vector<4x32xf32> -> vector<4x32xf32>
    %13 = vector.extract_strided_slice %2 {offsets = [0, 0, 0], sizes = [1, 8, 4], strides = [1, 1, 1]} : vector<4x8x4xf32> to vector<1x8x4xf32>
    %14 = vector.shape_cast %13 : vector<1x8x4xf32> to vector<8x4xf32>
    %cst_12 = arith.constant dense<0.000000e+00> : vector<8x32xf32>
    %15 = tpu.matmul %14, %9, %cst_12 {dimension_numbers = #tpu.dot_dimension_numbers<[1], [0], [0], [1], [0, 0, 1, 1], [], []>} : vector<8x4xf32>, vector<4x32xf32>, vector<8x32xf32> -> vector<8x32xf32>
    %16 = vector.extract_strided_slice %2 {offsets = [1, 0, 0], sizes = [1, 8, 4], strides = [1, 1, 1]} : vector<4x8x4xf32> to vector<1x8x4xf32>
    %17 = vector.shape_cast %16 : vector<1x8x4xf32> to vector<8x4xf32>
    %cst_13 = arith.constant dense<0.000000e+00> : vector<8x32xf32>
    %18 = tpu.matmul %17, %12, %cst_13 {dimension_numbers = #tpu.dot_dimension_numbers<[1], [0], [0], [1], [0, 0, 1, 1], [], []>} : vector<8x4xf32>, vector<4x32xf32>, vector<8x32xf32> -> vector<8x32xf32>
    %19 = arith.addf %15, %18 : vector<8x32xf32>
    %20 = vector.broadcast %4 : vector<8x1xf32> to vector<8x32xf32>
    %21 = arith.addf %19, %20 : vector<8x32xf32>
    %22 = vector.extract_strided_slice %2 {offsets = [2, 0, 0], sizes = [1, 8, 4], strides = [1, 1, 1]} : vector<4x8x4xf32> to vector<1x8x4xf32>
    %23 = vector.shape_cast %22 : vector<1x8x4xf32> to vector<8x4xf32>
    %cst_14 = arith.constant dense<0.000000e+00> : vector<8x32xf32>
    %24 = tpu.matmul %23, %9, %cst_14 {dimension_numbers = #tpu.dot_dimension_numbers<[1], [0], [0], [1], [0, 0, 1, 1], [], []>} : vector<8x4xf32>, vector<4x32xf32>, vector<8x32xf32> -> vector<8x32xf32>
    %25 = vector.extract_strided_slice %2 {offsets = [3, 0, 0], sizes = [1, 8, 4], strides = [1, 1, 1]} : vector<4x8x4xf32> to vector<1x8x4xf32>
    %26 = vector.shape_cast %25 : vector<1x8x4xf32> to vector<8x4xf32>
    %cst_15 = arith.constant dense<0.000000e+00> : vector<8x32xf32>
    %27 = tpu.matmul %26, %12, %cst_15 {dimension_numbers = #tpu.dot_dimension_numbers<[1], [0], [0], [1], [0, 0, 1, 1], [], []>} : vector<8x4xf32>, vector<4x32xf32>, vector<8x32xf32> -> vector<8x32xf32>
    %28 = arith.addf %24, %27 : vector<8x32xf32>
    %29 = vector.broadcast %4 : vector<8x1xf32> to vector<8x32xf32>
    %30 = arith.addf %28, %29 : vector<8x32xf32>
    %31 = vector.shape_cast %21 : vector<8x32xf32> to vector<8x1x32xf32>
    %c0_16 = arith.constant 0 : index
    %c0_17 = arith.constant 0 : index
    %c0_18 = arith.constant 0 : index
    %c0_19 = arith.constant 0 : index
    %32 = vector.load %arg6[%c0_16, %c0_17, %c0_18, %c0_19] : memref<1x8x16x32xf32, #tpu.memory_space<vmem>>, vector<1x8x1x32xf32>
    %33 = vector.shape_cast %32 : vector<1x8x1x32xf32> to vector<8x1x32xf32>
    %34 = vector.shape_cast %31 : vector<8x1x32xf32> to vector<1x8x1x32xf32>
    tpu.vector_store %arg6[%c0_16, %c0_17, %c0_18, %c0_19], %34 {strides = array<i32>} : memref<1x8x16x32xf32, #tpu.memory_space<vmem>>, vector<1x8x1x32xf32>,
    %35 = vector.shape_cast %30 : vector<8x32xf32> to vector<8x1x32xf32>
    %c0_20 = arith.constant 0 : index
    %c0_21 = arith.constant 0 : index
    %c1 = arith.constant 1 : index
    %c0_22 = arith.constant 0 : index
    %36 = vector.load %arg6[%c0_20, %c0_21, %c1, %c0_22] : memref<1x8x16x32xf32, #tpu.memory_space<vmem>>, vector<1x8x1x32xf32>
    %37 = vector.shape_cast %36 : vector<1x8x1x32xf32> to vector<8x1x32xf32>
    %38 = vector.shape_cast %35 : vector<8x1x32xf32> to vector<1x8x1x32xf32>
    tpu.vector_store %arg6[%c0_20, %c0_21, %c1, %c0_22], %38 {strides = array<i32>} : memref<1x8x16x32xf32, #tpu.memory_space<vmem>>, vector<1x8x1x32xf32>,
    %39 = vector.extract_strided_slice %1 {offsets = [0, 1, 0], sizes = [4, 1, 16], strides = [1, 1, 1]} : vector<4x8x16xf32> to vector<4x1x16xf32>
    %40 = vector.shape_cast %39 : vector<4x1x16xf32> to vector<4x16xf32>
    %41 = vector.extract_strided_slice %3 {offsets = [0, 0, 0], sizes = [1, 16, 32], strides = [1, 1, 1]} : vector<2x16x32xf32> to vector<1x16x32xf32>
    %42 = vector.shape_cast %41 : vector<1x16x32xf32> to vector<16x32xf32>
    %cst_23 = arith.constant dense<0.000000e+00> : vector<4x32xf32>
    %43 = tpu.matmul %40, %42, %cst_23 {dimension_numbers = #tpu.dot_dimension_numbers<[1], [0], [0], [1], [0, 0, 1, 1], [], []>} : vector<4x16xf32>, vector<16x32xf32>, vector<4x32xf32> -> vector<4x32xf32>
    %44 = vector.extract_strided_slice %3 {offsets = [1, 0, 0], sizes = [1, 16, 32], strides = [1, 1, 1]} : vector<2x16x32xf32> to vector<1x16x32xf32>
    %45 = vector.shape_cast %44 : vector<1x16x32xf32> to vector<16x32xf32>
    %cst_24 = arith.constant dense<0.000000e+00> : vector<4x32xf32>
    %46 = tpu.matmul %40, %45, %cst_24 {dimension_numbers = #tpu.dot_dimension_numbers<[1], [0], [0], [1], [0, 0, 1, 1], [], []>} : vector<4x16xf32>, vector<16x32xf32>, vector<4x32xf32> -> vector<4x32xf32>
    %47 = vector.extract_strided_slice %2 {offsets = [0, 0, 0], sizes = [1, 8, 4], strides = [1, 1, 1]} : vector<4x8x4xf32> to vector<1x8x4xf32>
    %48 = vector.shape_cast %47 : vector<1x8x4xf32> to vector<8x4xf32>
    %cst_25 = arith.constant dense<0.000000e+00> : vector<8x32xf32>
    %49 = tpu.matmul %48, %43, %cst_25 {dimension_numbers = #tpu.dot_dimension_numbers<[1], [0], [0], [1], [0, 0, 1, 1], [], []>} : vector<8x4xf32>, vector<4x32xf32>, vector<8x32xf32> -> vector<8x32xf32>
    %50 = vector.extract_strided_slice %2 {offsets = [1, 0, 0], sizes = [1, 8, 4], strides = [1, 1, 1]} : vector<4x8x4xf32> to vector<1x8x4xf32>
    %51 = vector.shape_cast %50 : vector<1x8x4xf32> to vector<8x4xf32>
    %cst_26 = arith.constant dense<0.000000e+00> : vector<8x32xf32>
    %52 = tpu.matmul %51, %46, %cst_26 {dimension_numbers = #tpu.dot_dimension_numbers<[1], [0], [0], [1], [0, 0, 1, 1], [], []>} : vector<8x4xf32>, vector<4x32xf32>, vector<8x32xf32> -> vector<8x32xf32>
    %53 = arith.addf %49, %52 : vector<8x32xf32>
    %54 = vector.broadcast %4 : vector<8x1xf32> to vector<8x32xf32>
    %55 = arith.addf %53, %54 : vector<8x32xf32>
    %56 = vector.extract_strided_slice %2 {offsets = [2, 0, 0], sizes = [1, 8, 4], strides = [1, 1, 1]} : vector<4x8x4xf32> to vector<1x8x4xf32>
    %57 = vector.shape_cast %56 : vector<1x8x4xf32> to vector<8x4xf32>
    %cst_27 = arith.constant dense<0.000000e+00> : vector<8x32xf32>
    %58 = tpu.matmul %57, %43, %cst_27 {dimension_numbers = #tpu.dot_dimension_numbers<[1], [0], [0], [1], [0, 0, 1, 1], [], []>} : vector<8x4xf32>, vector<4x32xf32>, vector<8x32xf32> -> vector<8x32xf32>
    %59 = vector.extract_strided_slice %2 {offsets = [3, 0, 0], sizes = [1, 8, 4], strides = [1, 1, 1]} : vector<4x8x4xf32> to vector<1x8x4xf32>
    %60 = vector.shape_cast %59 : vector<1x8x4xf32> to vector<8x4xf32>
    %cst_28 = arith.constant dense<0.000000e+00> : vector<8x32xf32>
    %61 = tpu.matmul %60, %46, %cst_28 {dimension_numbers = #tpu.dot_dimension_numbers<[1], [0], [0], [1], [0, 0, 1, 1], [], []>} : vector<8x4xf32>, vector<4x32xf32>, vector<8x32xf32> -> vector<8x32xf32>
    %62 = arith.addf %58, %61 : vector<8x32xf32>
    %63 = vector.broadcast %4 : vector<8x1xf32> to vector<8x32xf32>
    %64 = arith.addf %62, %63 : vector<8x32xf32>
    %65 = vector.shape_cast %55 : vector<8x32xf32> to vector<8x1x32xf32>
    %c0_29 = arith.constant 0 : index
    %c0_30 = arith.constant 0 : index
    %c2 = arith.constant 2 : index
    %c0_31 = arith.constant 0 : index
    %66 = vector.load %arg6[%c0_29, %c0_30, %c2, %c0_31] : memref<1x8x16x32xf32, #tpu.memory_space<vmem>>, vector<1x8x1x32xf32>
    %67 = vector.shape_cast %66 : vector<1x8x1x32xf32> to vector<8x1x32xf32>
    %68 = vector.shape_cast %65 : vector<8x1x32xf32> to vector<1x8x1x32xf32>
    tpu.vector_store %arg6[%c0_29, %c0_30, %c2, %c0_31], %68 {strides = array<i32>} : memref<1x8x16x32xf32, #tpu.memory_space<vmem>>, vector<1x8x1x32xf32>,
    %69 = vector.shape_cast %64 : vector<8x32xf32> to vector<8x1x32xf32>
    %c0_32 = arith.constant 0 : index
    %c0_33 = arith.constant 0 : index
    %c3 = arith.constant 3 : index
    %c0_34 = arith.constant 0 : index
    %70 = vector.load %arg6[%c0_32, %c0_33, %c3, %c0_34] : memref<1x8x16x32xf32, #tpu.memory_space<vmem>>, vector<1x8x1x32xf32>
    %71 = vector.shape_cast %70 : vector<1x8x1x32xf32> to vector<8x1x32xf32>
    %72 = vector.shape_cast %69 : vector<8x1x32xf32> to vector<1x8x1x32xf32>
    tpu.vector_store %arg6[%c0_32, %c0_33, %c3, %c0_34], %72 {strides = array<i32>} : memref<1x8x16x32xf32, #tpu.memory_space<vmem>>, vector<1x8x1x32xf32>,
    %73 = vector.extract_strided_slice %1 {offsets = [0, 2, 0], sizes = [4, 1, 16], strides = [1, 1, 1]} : vector<4x8x16xf32> to vector<4x1x16xf32>
    %74 = vector.shape_cast %73 : vector<4x1x16xf32> to vector<4x16xf32>
    %75 = vector.extract_strided_slice %3 {offsets = [0, 0, 0], sizes = [1, 16, 32], strides = [1, 1, 1]} : vector<2x16x32xf32> to vector<1x16x32xf32>
    %76 = vector.shape_cast %75 : vector<1x16x32xf32> to vector<16x32xf32>
    %cst_35 = arith.constant dense<0.000000e+00> : vector<4x32xf32>
    %77 = tpu.matmul %74, %76, %cst_35 {dimension_numbers = #tpu.dot_dimension_numbers<[1], [0], [0], [1], [0, 0, 1, 1], [], []>} : vector<4x16xf32>, vector<16x32xf32>, vector<4x32xf32> -> vector<4x32xf32>
    %78 = vector.extract_strided_slice %3 {offsets = [1, 0, 0], sizes = [1, 16, 32], strides = [1, 1, 1]} : vector<2x16x32xf32> to vector<1x16x32xf32>
    %79 = vector.shape_cast %78 : vector<1x16x32xf32> to vector<16x32xf32>
    %cst_36 = arith.constant dense<0.000000e+00> : vector<4x32xf32>
    %80 = tpu.matmul %74, %79, %cst_36 {dimension_numbers = #tpu.dot_dimension_numbers<[1], [0], [0], [1], [0, 0, 1, 1], [], []>} : vector<4x16xf32>, vector<16x32xf32>, vector<4x32xf32> -> vector<4x32xf32>
    %81 = vector.extract_strided_slice %2 {offsets = [0, 0, 0], sizes = [1, 8, 4], strides = [1, 1, 1]} : vector<4x8x4xf32> to vector<1x8x4xf32>
    %82 = vector.shape_cast %81 : vector<1x8x4xf32> to vector<8x4xf32>
    %cst_37 = arith.constant dense<0.000000e+00> : vector<8x32xf32>
    %83 = tpu.matmul %82, %77, %cst_37 {dimension_numbers = #tpu.dot_dimension_numbers<[1], [0], [0], [1], [0, 0, 1, 1], [], []>} : vector<8x4xf32>, vector<4x32xf32>, vector<8x32xf32> -> vector<8x32xf32>
    %84 = vector.extract_strided_slice %2 {offsets = [1, 0, 0], sizes = [1, 8, 4], strides = [1, 1, 1]} : vector<4x8x4xf32> to vector<1x8x4xf32>
    %85 = vector.shape_cast %84 : vector<1x8x4xf32> to vector<8x4xf32>
    %cst_38 = arith.constant dense<0.000000e+00> : vector<8x32xf32>
    %86 = tpu.matmul %85, %80, %cst_38 {dimension_numbers = #tpu.dot_dimension_numbers<[1], [0], [0], [1], [0, 0, 1, 1], [], []>} : vector<8x4xf32>, vector<4x32xf32>, vector<8x32xf32> -> vector<8x32xf32>
    %87 = arith.addf %83, %86 : vector<8x32xf32>
    %88 = vector.broadcast %4 : vector<8x1xf32> to vector<8x32xf32>
    %89 = arith.addf %87, %88 : vector<8x32xf32>
    %90 = vector.extract_strided_slice %2 {offsets = [2, 0, 0], sizes = [1, 8, 4], strides = [1, 1, 1]} : vector<4x8x4xf32> to vector<1x8x4xf32>
    %91 = vector.shape_cast %90 : vector<1x8x4xf32> to vector<8x4xf32>
    %cst_39 = arith.constant dense<0.000000e+00> : vector<8x32xf32>
    %92 = tpu.matmul %91, %77, %cst_39 {dimension_numbers = #tpu.dot_dimension_numbers<[1], [0], [0], [1], [0, 0, 1, 1], [], []>} : vector<8x4xf32>, vector<4x32xf32>, vector<8x32xf32> -> vector<8x32xf32>
    %93 = vector.extract_strided_slice %2 {offsets = [3, 0, 0], sizes = [1, 8, 4], strides = [1, 1, 1]} : vector<4x8x4xf32> to vector<1x8x4xf32>
    %94 = vector.shape_cast %93 : vector<1x8x4xf32> to vector<8x4xf32>
    %cst_40 = arith.constant dense<0.000000e+00> : vector<8x32xf32>
    %95 = tpu.matmul %94, %80, %cst_40 {dimension_numbers = #tpu.dot_dimension_numbers<[1], [0], [0], [1], [0, 0, 1, 1], [], []>} : vector<8x4xf32>, vector<4x32xf32>, vector<8x32xf32> -> vector<8x32xf32>
    %96 = arith.addf %92, %95 : vector<8x32xf32>
    %97 = vector.broadcast %4 : vector<8x1xf32> to vector<8x32xf32>
    %98 = arith.addf %96, %97 : vector<8x32xf32>
    %99 = vector.shape_cast %89 : vector<8x32xf32> to vector<8x1x32xf32>
    %c0_41 = arith.constant 0 : index
    %c0_42 = arith.constant 0 : index
    %c4 = arith.constant 4 : index
    %c0_43 = arith.constant 0 : index
    %100 = vector.load %arg6[%c0_41, %c0_42, %c4, %c0_43] : memref<1x8x16x32xf32, #tpu.memory_space<vmem>>, vector<1x8x1x32xf32>
    %101 = vector.shape_cast %100 : vector<1x8x1x32xf32> to vector<8x1x32xf32>
    %102 = vector.shape_cast %99 : vector<8x1x32xf32> to vector<1x8x1x32xf32>
    tpu.vector_store %arg6[%c0_41, %c0_42, %c4, %c0_43], %102 {strides = array<i32>} : memref<1x8x16x32xf32, #tpu.memory_space<vmem>>, vector<1x8x1x32xf32>,
    %103 = vector.shape_cast %98 : vector<8x32xf32> to vector<8x1x32xf32>
    %c0_44 = arith.constant 0 : index
    %c0_45 = arith.constant 0 : index
    %c5 = arith.constant 5 : index
    %c0_46 = arith.constant 0 : index
    %104 = vector.load %arg6[%c0_44, %c0_45, %c5, %c0_46] : memref<1x8x16x32xf32, #tpu.memory_space<vmem>>, vector<1x8x1x32xf32>
    %105 = vector.shape_cast %104 : vector<1x8x1x32xf32> to vector<8x1x32xf32>
    %106 = vector.shape_cast %103 : vector<8x1x32xf32> to vector<1x8x1x32xf32>
    tpu.vector_store %arg6[%c0_44, %c0_45, %c5, %c0_46], %106 {strides = array<i32>} : memref<1x8x16x32xf32, #tpu.memory_space<vmem>>, vector<1x8x1x32xf32>,
    %107 = vector.extract_strided_slice %1 {offsets = [0, 3, 0], sizes = [4, 1, 16], strides = [1, 1, 1]} : vector<4x8x16xf32> to vector<4x1x16xf32>
    %108 = vector.shape_cast %107 : vector<4x1x16xf32> to vector<4x16xf32>
    %109 = vector.extract_strided_slice %3 {offsets = [0, 0, 0], sizes = [1, 16, 32], strides = [1, 1, 1]} : vector<2x16x32xf32> to vector<1x16x32xf32>
    %110 = vector.shape_cast %109 : vector<1x16x32xf32> to vector<16x32xf32>
    %cst_47 = arith.constant dense<0.000000e+00> : vector<4x32xf32>
    %111 = tpu.matmul %108, %110, %cst_47 {dimension_numbers = #tpu.dot_dimension_numbers<[1], [0], [0], [1], [0, 0, 1, 1], [], []>} : vector<4x16xf32>, vector<16x32xf32>, vector<4x32xf32> -> vector<4x32xf32>
    %112 = vector.extract_strided_slice %3 {offsets = [1, 0, 0], sizes = [1, 16, 32], strides = [1, 1, 1]} : vector<2x16x32xf32> to vector<1x16x32xf32>
    %113 = vector.shape_cast %112 : vector<1x16x32xf32> to vector<16x32xf32>
    %cst_48 = arith.constant dense<0.000000e+00> : vector<4x32xf32>
    %114 = tpu.matmul %108, %113, %cst_48 {dimension_numbers = #tpu.dot_dimension_numbers<[1], [0], [0], [1], [0, 0, 1, 1], [], []>} : vector<4x16xf32>, vector<16x32xf32>, vector<4x32xf32> -> vector<4x32xf32>
    %115 = vector.extract_strided_slice %2 {offsets = [0, 0, 0], sizes = [1, 8, 4], strides = [1, 1, 1]} : vector<4x8x4xf32> to vector<1x8x4xf32>
    %116 = vector.shape_cast %115 : vector<1x8x4xf32> to vector<8x4xf32>
    %cst_49 = arith.constant dense<0.000000e+00> : vector<8x32xf32>
    %117 = tpu.matmul %116, %111, %cst_49 {dimension_numbers = #tpu.dot_dimension_numbers<[1], [0], [0], [1], [0, 0, 1, 1], [], []>} : vector<8x4xf32>, vector<4x32xf32>, vector<8x32xf32> -> vector<8x32xf32>
    %118 = vector.extract_strided_slice %2 {offsets = [1, 0, 0], sizes = [1, 8, 4], strides = [1, 1, 1]} : vector<4x8x4xf32> to vector<1x8x4xf32>
    %119 = vector.shape_cast %118 : vector<1x8x4xf32> to vector<8x4xf32>
    %cst_50 = arith.constant dense<0.000000e+00> : vector<8x32xf32>
    %120 = tpu.matmul %119, %114, %cst_50 {dimension_numbers = #tpu.dot_dimension_numbers<[1], [0], [0], [1], [0, 0, 1, 1], [], []>} : vector<8x4xf32>, vector<4x32xf32>, vector<8x32xf32> -> vector<8x32xf32>
    %121 = arith.addf %117, %120 : vector<8x32xf32>
    %122 = vector.broadcast %4 : vector<8x1xf32> to vector<8x32xf32>
    %123 = arith.addf %121, %122 : vector<8x32xf32>
    %124 = vector.extract_strided_slice %2 {offsets = [2, 0, 0], sizes = [1, 8, 4], strides = [1, 1, 1]} : vector<4x8x4xf32> to vector<1x8x4xf32>
    %125 = vector.shape_cast %124 : vector<1x8x4xf32> to vector<8x4xf32>
    %cst_51 = arith.constant dense<0.000000e+00> : vector<8x32xf32>
    %126 = tpu.matmul %125, %111, %cst_51 {dimension_numbers = #tpu.dot_dimension_numbers<[1], [0], [0], [1], [0, 0, 1, 1], [], []>} : vector<8x4xf32>, vector<4x32xf32>, vector<8x32xf32> -> vector<8x32xf32>
    %127 = vector.extract_strided_slice %2 {offsets = [3, 0, 0], sizes = [1, 8, 4], strides = [1, 1, 1]} : vector<4x8x4xf32> to vector<1x8x4xf32>
    %128 = vector.shape_cast %127 : vector<1x8x4xf32> to vector<8x4xf32>
    %cst_52 = arith.constant dense<0.000000e+00> : vector<8x32xf32>
    %129 = tpu.matmul %128, %114, %cst_52 {dimension_numbers = #tpu.dot_dimension_numbers<[1], [0], [0], [1], [0, 0, 1, 1], [], []>} : vector<8x4xf32>, vector<4x32xf32>, vector<8x32xf32> -> vector<8x32xf32>
    %130 = arith.addf %126, %129 : vector<8x32xf32>
    %131 = vector.broadcast %4 : vector<8x1xf32> to vector<8x32xf32>
    %132 = arith.addf %130, %131 : vector<8x32xf32>
    %133 = vector.shape_cast %123 : vector<8x32xf32> to vector<8x1x32xf32>
    %c0_53 = arith.constant 0 : index
    %c0_54 = arith.constant 0 : index
    %c6 = arith.constant 6 : index
    %c0_55 = arith.constant 0 : index
    %134 = vector.load %arg6[%c0_53, %c0_54, %c6, %c0_55] : memref<1x8x16x32xf32, #tpu.memory_space<vmem>>, vector<1x8x1x32xf32>
    %135 = vector.shape_cast %134 : vector<1x8x1x32xf32> to vector<8x1x32xf32>
    %136 = vector.shape_cast %133 : vector<8x1x32xf32> to vector<1x8x1x32xf32>
    tpu.vector_store %arg6[%c0_53, %c0_54, %c6, %c0_55], %136 {strides = array<i32>} : memref<1x8x16x32xf32, #tpu.memory_space<vmem>>, vector<1x8x1x32xf32>,
    %137 = vector.shape_cast %132 : vector<8x32xf32> to vector<8x1x32xf32>
    %c0_56 = arith.constant 0 : index
    %c0_57 = arith.constant 0 : index
    %c7 = arith.constant 7 : index
    %c0_58 = arith.constant 0 : index
    %138 = vector.load %arg6[%c0_56, %c0_57, %c7, %c0_58] : memref<1x8x16x32xf32, #tpu.memory_space<vmem>>, vector<1x8x1x32xf32>
    %139 = vector.shape_cast %138 : vector<1x8x1x32xf32> to vector<8x1x32xf32>
    %140 = vector.shape_cast %137 : vector<8x1x32xf32> to vector<1x8x1x32xf32>
    tpu.vector_store %arg6[%c0_56, %c0_57, %c7, %c0_58], %140 {strides = array<i32>} : memref<1x8x16x32xf32, #tpu.memory_space<vmem>>, vector<1x8x1x32xf32>,
    %141 = vector.extract_strided_slice %1 {offsets = [0, 4, 0], sizes = [4, 1, 16], strides = [1, 1, 1]} : vector<4x8x16xf32> to vector<4x1x16xf32>
    %142 = vector.shape_cast %141 : vector<4x1x16xf32> to vector<4x16xf32>
    %143 = vector.extract_strided_slice %3 {offsets = [0, 0, 0], sizes = [1, 16, 32], strides = [1, 1, 1]} : vector<2x16x32xf32> to vector<1x16x32xf32>
    %144 = vector.shape_cast %143 : vector<1x16x32xf32> to vector<16x32xf32>
    %cst_59 = arith.constant dense<0.000000e+00> : vector<4x32xf32>
    %145 = tpu.matmul %142, %144, %cst_59 {dimension_numbers = #tpu.dot_dimension_numbers<[1], [0], [0], [1], [0, 0, 1, 1], [], []>} : vector<4x16xf32>, vector<16x32xf32>, vector<4x32xf32> -> vector<4x32xf32>
    %146 = vector.extract_strided_slice %3 {offsets = [1, 0, 0], sizes = [1, 16, 32], strides = [1, 1, 1]} : vector<2x16x32xf32> to vector<1x16x32xf32>
    %147 = vector.shape_cast %146 : vector<1x16x32xf32> to vector<16x32xf32>
    %cst_60 = arith.constant dense<0.000000e+00> : vector<4x32xf32>
    %148 = tpu.matmul %142, %147, %cst_60 {dimension_numbers = #tpu.dot_dimension_numbers<[1], [0], [0], [1], [0, 0, 1, 1], [], []>} : vector<4x16xf32>, vector<16x32xf32>, vector<4x32xf32> -> vector<4x32xf32>
    %149 = vector.extract_strided_slice %2 {offsets = [0, 0, 0], sizes = [1, 8, 4], strides = [1, 1, 1]} : vector<4x8x4xf32> to vector<1x8x4xf32>
    %150 = vector.shape_cast %149 : vector<1x8x4xf32> to vector<8x4xf32>
    %cst_61 = arith.constant dense<0.000000e+00> : vector<8x32xf32>
    %151 = tpu.matmul %150, %145, %cst_61 {dimension_numbers = #tpu.dot_dimension_numbers<[1], [0], [0], [1], [0, 0, 1, 1], [], []>} : vector<8x4xf32>, vector<4x32xf32>, vector<8x32xf32> -> vector<8x32xf32>
    %152 = vector.extract_strided_slice %2 {offsets = [1, 0, 0], sizes = [1, 8, 4], strides = [1, 1, 1]} : vector<4x8x4xf32> to vector<1x8x4xf32>
    %153 = vector.shape_cast %152 : vector<1x8x4xf32> to vector<8x4xf32>
    %cst_62 = arith.constant dense<0.000000e+00> : vector<8x32xf32>
    %154 = tpu.matmul %153, %148, %cst_62 {dimension_numbers = #tpu.dot_dimension_numbers<[1], [0], [0], [1], [0, 0, 1, 1], [], []>} : vector<8x4xf32>, vector<4x32xf32>, vector<8x32xf32> -> vector<8x32xf32>
    %155 = arith.addf %151, %154 : vector<8x32xf32>
    %156 = vector.broadcast %4 : vector<8x1xf32> to vector<8x32xf32>
    %157 = arith.addf %155, %156 : vector<8x32xf32>
    %158 = vector.extract_strided_slice %2 {offsets = [2, 0, 0], sizes = [1, 8, 4], strides = [1, 1, 1]} : vector<4x8x4xf32> to vector<1x8x4xf32>
    %159 = vector.shape_cast %158 : vector<1x8x4xf32> to vector<8x4xf32>
    %cst_63 = arith.constant dense<0.000000e+00> : vector<8x32xf32>
    %160 = tpu.matmul %159, %145, %cst_63 {dimension_numbers = #tpu.dot_dimension_numbers<[1], [0], [0], [1], [0, 0, 1, 1], [], []>} : vector<8x4xf32>, vector<4x32xf32>, vector<8x32xf32> -> vector<8x32xf32>
    %161 = vector.extract_strided_slice %2 {offsets = [3, 0, 0], sizes = [1, 8, 4], strides = [1, 1, 1]} : vector<4x8x4xf32> to vector<1x8x4xf32>
    %162 = vector.shape_cast %161 : vector<1x8x4xf32> to vector<8x4xf32>
    %cst_64 = arith.constant dense<0.000000e+00> : vector<8x32xf32>
    %163 = tpu.matmul %162, %148, %cst_64 {dimension_numbers = #tpu.dot_dimension_numbers<[1], [0], [0], [1], [0, 0, 1, 1], [], []>} : vector<8x4xf32>, vector<4x32xf32>, vector<8x32xf32> -> vector<8x32xf32>
    %164 = arith.addf %160, %163 : vector<8x32xf32>
    %165 = vector.broadcast %4 : vector<8x1xf32> to vector<8x32xf32>
    %166 = arith.addf %164, %165 : vector<8x32xf32>
    %167 = vector.shape_cast %157 : vector<8x32xf32> to vector<8x1x32xf32>
    %c0_65 = arith.constant 0 : index
    %c0_66 = arith.constant 0 : index
    %c8 = arith.constant 8 : index
    %c0_67 = arith.constant 0 : index
    %168 = vector.load %arg6[%c0_65, %c0_66, %c8, %c0_67] : memref<1x8x16x32xf32, #tpu.memory_space<vmem>>, vector<1x8x1x32xf32>
    %169 = vector.shape_cast %168 : vector<1x8x1x32xf32> to vector<8x1x32xf32>
    %170 = vector.shape_cast %167 : vector<8x1x32xf32> to vector<1x8x1x32xf32>
    tpu.vector_store %arg6[%c0_65, %c0_66, %c8, %c0_67], %170 {strides = array<i32>} : memref<1x8x16x32xf32, #tpu.memory_space<vmem>>, vector<1x8x1x32xf32>,
    %171 = vector.shape_cast %166 : vector<8x32xf32> to vector<8x1x32xf32>
    %c0_68 = arith.constant 0 : index
    %c0_69 = arith.constant 0 : index
    %c9 = arith.constant 9 : index
    %c0_70 = arith.constant 0 : index
    %172 = vector.load %arg6[%c0_68, %c0_69, %c9, %c0_70] : memref<1x8x16x32xf32, #tpu.memory_space<vmem>>, vector<1x8x1x32xf32>
    %173 = vector.shape_cast %172 : vector<1x8x1x32xf32> to vector<8x1x32xf32>
    %174 = vector.shape_cast %171 : vector<8x1x32xf32> to vector<1x8x1x32xf32>
    tpu.vector_store %arg6[%c0_68, %c0_69, %c9, %c0_70], %174 {strides = array<i32>} : memref<1x8x16x32xf32, #tpu.memory_space<vmem>>, vector<1x8x1x32xf32>,
    %175 = vector.extract_strided_slice %1 {offsets = [0, 5, 0], sizes = [4, 1, 16], strides = [1, 1, 1]} : vector<4x8x16xf32> to vector<4x1x16xf32>
    %176 = vector.shape_cast %175 : vector<4x1x16xf32> to vector<4x16xf32>
    %177 = vector.extract_strided_slice %3 {offsets = [0, 0, 0], sizes = [1, 16, 32], strides = [1, 1, 1]} : vector<2x16x32xf32> to vector<1x16x32xf32>
    %178 = vector.shape_cast %177 : vector<1x16x32xf32> to vector<16x32xf32>
    %cst_71 = arith.constant dense<0.000000e+00> : vector<4x32xf32>
    %179 = tpu.matmul %176, %178, %cst_71 {dimension_numbers = #tpu.dot_dimension_numbers<[1], [0], [0], [1], [0, 0, 1, 1], [], []>} : vector<4x16xf32>, vector<16x32xf32>, vector<4x32xf32> -> vector<4x32xf32>
    %180 = vector.extract_strided_slice %3 {offsets = [1, 0, 0], sizes = [1, 16, 32], strides = [1, 1, 1]} : vector<2x16x32xf32> to vector<1x16x32xf32>
    %181 = vector.shape_cast %180 : vector<1x16x32xf32> to vector<16x32xf32>
    %cst_72 = arith.constant dense<0.000000e+00> : vector<4x32xf32>
    %182 = tpu.matmul %176, %181, %cst_72 {dimension_numbers = #tpu.dot_dimension_numbers<[1], [0], [0], [1], [0, 0, 1, 1], [], []>} : vector<4x16xf32>, vector<16x32xf32>, vector<4x32xf32> -> vector<4x32xf32>
    %183 = vector.extract_strided_slice %2 {offsets = [0, 0, 0], sizes = [1, 8, 4], strides = [1, 1, 1]} : vector<4x8x4xf32> to vector<1x8x4xf32>
    %184 = vector.shape_cast %183 : vector<1x8x4xf32> to vector<8x4xf32>
    %cst_73 = arith.constant dense<0.000000e+00> : vector<8x32xf32>
    %185 = tpu.matmul %184, %179, %cst_73 {dimension_numbers = #tpu.dot_dimension_numbers<[1], [0], [0], [1], [0, 0, 1, 1], [], []>} : vector<8x4xf32>, vector<4x32xf32>, vector<8x32xf32> -> vector<8x32xf32>
    %186 = vector.extract_strided_slice %2 {offsets = [1, 0, 0], sizes = [1, 8, 4], strides = [1, 1, 1]} : vector<4x8x4xf32> to vector<1x8x4xf32>
    %187 = vector.shape_cast %186 : vector<1x8x4xf32> to vector<8x4xf32>
    %cst_74 = arith.constant dense<0.000000e+00> : vector<8x32xf32>
    %188 = tpu.matmul %187, %182, %cst_74 {dimension_numbers = #tpu.dot_dimension_numbers<[1], [0], [0], [1], [0, 0, 1, 1], [], []>} : vector<8x4xf32>, vector<4x32xf32>, vector<8x32xf32> -> vector<8x32xf32>
    %189 = arith.addf %185, %188 : vector<8x32xf32>
    %190 = vector.broadcast %4 : vector<8x1xf32> to vector<8x32xf32>
    %191 = arith.addf %189, %190 : vector<8x32xf32>
    %192 = vector.extract_strided_slice %2 {offsets = [2, 0, 0], sizes = [1, 8, 4], strides = [1, 1, 1]} : vector<4x8x4xf32> to vector<1x8x4xf32>
    %193 = vector.shape_cast %192 : vector<1x8x4xf32> to vector<8x4xf32>
    %cst_75 = arith.constant dense<0.000000e+00> : vector<8x32xf32>
    %194 = tpu.matmul %193, %179, %cst_75 {dimension_numbers = #tpu.dot_dimension_numbers<[1], [0], [0], [1], [0, 0, 1, 1], [], []>} : vector<8x4xf32>, vector<4x32xf32>, vector<8x32xf32> -> vector<8x32xf32>
    %195 = vector.extract_strided_slice %2 {offsets = [3, 0, 0], sizes = [1, 8, 4], strides = [1, 1, 1]} : vector<4x8x4xf32> to vector<1x8x4xf32>
    %196 = vector.shape_cast %195 : vector<1x8x4xf32> to vector<8x4xf32>
    %cst_76 = arith.constant dense<0.000000e+00> : vector<8x32xf32>
    %197 = tpu.matmul %196, %182, %cst_76 {dimension_numbers = #tpu.dot_dimension_numbers<[1], [0], [0], [1], [0, 0, 1, 1], [], []>} : vector<8x4xf32>, vector<4x32xf32>, vector<8x32xf32> -> vector<8x32xf32>
    %198 = arith.addf %194, %197 : vector<8x32xf32>
    %199 = vector.broadcast %4 : vector<8x1xf32> to vector<8x32xf32>
    %200 = arith.addf %198, %199 : vector<8x32xf32>
    %201 = vector.shape_cast %191 : vector<8x32xf32> to vector<8x1x32xf32>
    %c0_77 = arith.constant 0 : index
    %c0_78 = arith.constant 0 : index
    %c10 = arith.constant 10 : index
    %c0_79 = arith.constant 0 : index
    %202 = vector.load %arg6[%c0_77, %c0_78, %c10, %c0_79] : memref<1x8x16x32xf32, #tpu.memory_space<vmem>>, vector<1x8x1x32xf32>
    %203 = vector.shape_cast %202 : vector<1x8x1x32xf32> to vector<8x1x32xf32>
    %204 = vector.shape_cast %201 : vector<8x1x32xf32> to vector<1x8x1x32xf32>
    tpu.vector_store %arg6[%c0_77, %c0_78, %c10, %c0_79], %204 {strides = array<i32>} : memref<1x8x16x32xf32, #tpu.memory_space<vmem>>, vector<1x8x1x32xf32>,
    %205 = vector.shape_cast %200 : vector<8x32xf32> to vector<8x1x32xf32>
    %c0_80 = arith.constant 0 : index
    %c0_81 = arith.constant 0 : index
    %c11 = arith.constant 11 : index
    %c0_82 = arith.constant 0 : index
    %206 = vector.load %arg6[%c0_80, %c0_81, %c11, %c0_82] : memref<1x8x16x32xf32, #tpu.memory_space<vmem>>, vector<1x8x1x32xf32>
    %207 = vector.shape_cast %206 : vector<1x8x1x32xf32> to vector<8x1x32xf32>
    %208 = vector.shape_cast %205 : vector<8x1x32xf32> to vector<1x8x1x32xf32>
    tpu.vector_store %arg6[%c0_80, %c0_81, %c11, %c0_82], %208 {strides = array<i32>} : memref<1x8x16x32xf32, #tpu.memory_space<vmem>>, vector<1x8x1x32xf32>,
    %209 = vector.extract_strided_slice %1 {offsets = [0, 6, 0], sizes = [4, 1, 16], strides = [1, 1, 1]} : vector<4x8x16xf32> to vector<4x1x16xf32>
    %210 = vector.shape_cast %209 : vector<4x1x16xf32> to vector<4x16xf32>
    %211 = vector.extract_strided_slice %3 {offsets = [0, 0, 0], sizes = [1, 16, 32], strides = [1, 1, 1]} : vector<2x16x32xf32> to vector<1x16x32xf32>
    %212 = vector.shape_cast %211 : vector<1x16x32xf32> to vector<16x32xf32>
    %cst_83 = arith.constant dense<0.000000e+00> : vector<4x32xf32>
    %213 = tpu.matmul %210, %212, %cst_83 {dimension_numbers = #tpu.dot_dimension_numbers<[1], [0], [0], [1], [0, 0, 1, 1], [], []>} : vector<4x16xf32>, vector<16x32xf32>, vector<4x32xf32> -> vector<4x32xf32>
    %214 = vector.extract_strided_slice %3 {offsets = [1, 0, 0], sizes = [1, 16, 32], strides = [1, 1, 1]} : vector<2x16x32xf32> to vector<1x16x32xf32>
    %215 = vector.shape_cast %214 : vector<1x16x32xf32> to vector<16x32xf32>
    %cst_84 = arith.constant dense<0.000000e+00> : vector<4x32xf32>
    %216 = tpu.matmul %210, %215, %cst_84 {dimension_numbers = #tpu.dot_dimension_numbers<[1], [0], [0], [1], [0, 0, 1, 1], [], []>} : vector<4x16xf32>, vector<16x32xf32>, vector<4x32xf32> -> vector<4x32xf32>
    %217 = vector.extract_strided_slice %2 {offsets = [0, 0, 0], sizes = [1, 8, 4], strides = [1, 1, 1]} : vector<4x8x4xf32> to vector<1x8x4xf32>
    %218 = vector.shape_cast %217 : vector<1x8x4xf32> to vector<8x4xf32>
    %cst_85 = arith.constant dense<0.000000e+00> : vector<8x32xf32>
    %219 = tpu.matmul %218, %213, %cst_85 {dimension_numbers = #tpu.dot_dimension_numbers<[1], [0], [0], [1], [0, 0, 1, 1], [], []>} : vector<8x4xf32>, vector<4x32xf32>, vector<8x32xf32> -> vector<8x32xf32>
    %220 = vector.extract_strided_slice %2 {offsets = [1, 0, 0], sizes = [1, 8, 4], strides = [1, 1, 1]} : vector<4x8x4xf32> to vector<1x8x4xf32>
    %221 = vector.shape_cast %220 : vector<1x8x4xf32> to vector<8x4xf32>
    %cst_86 = arith.constant dense<0.000000e+00> : vector<8x32xf32>
    %222 = tpu.matmul %221, %216, %cst_86 {dimension_numbers = #tpu.dot_dimension_numbers<[1], [0], [0], [1], [0, 0, 1, 1], [], []>} : vector<8x4xf32>, vector<4x32xf32>, vector<8x32xf32> -> vector<8x32xf32>
    %223 = arith.addf %219, %222 : vector<8x32xf32>
    %224 = vector.broadcast %4 : vector<8x1xf32> to vector<8x32xf32>
    %225 = arith.addf %223, %224 : vector<8x32xf32>
    %226 = vector.extract_strided_slice %2 {offsets = [2, 0, 0], sizes = [1, 8, 4], strides = [1, 1, 1]} : vector<4x8x4xf32> to vector<1x8x4xf32>
    %227 = vector.shape_cast %226 : vector<1x8x4xf32> to vector<8x4xf32>
    %cst_87 = arith.constant dense<0.000000e+00> : vector<8x32xf32>
    %228 = tpu.matmul %227, %213, %cst_87 {dimension_numbers = #tpu.dot_dimension_numbers<[1], [0], [0], [1], [0, 0, 1, 1], [], []>} : vector<8x4xf32>, vector<4x32xf32>, vector<8x32xf32> -> vector<8x32xf32>
    %229 = vector.extract_strided_slice %2 {offsets = [3, 0, 0], sizes = [1, 8, 4], strides = [1, 1, 1]} : vector<4x8x4xf32> to vector<1x8x4xf32>
    %230 = vector.shape_cast %229 : vector<1x8x4xf32> to vector<8x4xf32>
    %cst_88 = arith.constant dense<0.000000e+00> : vector<8x32xf32>
    %231 = tpu.matmul %230, %216, %cst_88 {dimension_numbers = #tpu.dot_dimension_numbers<[1], [0], [0], [1], [0, 0, 1, 1], [], []>} : vector<8x4xf32>, vector<4x32xf32>, vector<8x32xf32> -> vector<8x32xf32>
    %232 = arith.addf %228, %231 : vector<8x32xf32>
    %233 = vector.broadcast %4 : vector<8x1xf32> to vector<8x32xf32>
    %234 = arith.addf %232, %233 : vector<8x32xf32>
    %235 = vector.shape_cast %225 : vector<8x32xf32> to vector<8x1x32xf32>
    %c0_89 = arith.constant 0 : index
    %c0_90 = arith.constant 0 : index
    %c12 = arith.constant 12 : index
    %c0_91 = arith.constant 0 : index
    %236 = vector.load %arg6[%c0_89, %c0_90, %c12, %c0_91] : memref<1x8x16x32xf32, #tpu.memory_space<vmem>>, vector<1x8x1x32xf32>
    %237 = vector.shape_cast %236 : vector<1x8x1x32xf32> to vector<8x1x32xf32>
    %238 = vector.shape_cast %235 : vector<8x1x32xf32> to vector<1x8x1x32xf32>
    tpu.vector_store %arg6[%c0_89, %c0_90, %c12, %c0_91], %238 {strides = array<i32>} : memref<1x8x16x32xf32, #tpu.memory_space<vmem>>, vector<1x8x1x32xf32>,
    %239 = vector.shape_cast %234 : vector<8x32xf32> to vector<8x1x32xf32>
    %c0_92 = arith.constant 0 : index
    %c0_93 = arith.constant 0 : index
    %c13 = arith.constant 13 : index
    %c0_94 = arith.constant 0 : index
    %240 = vector.load %arg6[%c0_92, %c0_93, %c13, %c0_94] : memref<1x8x16x32xf32, #tpu.memory_space<vmem>>, vector<1x8x1x32xf32>
    %241 = vector.shape_cast %240 : vector<1x8x1x32xf32> to vector<8x1x32xf32>
    %242 = vector.shape_cast %239 : vector<8x1x32xf32> to vector<1x8x1x32xf32>
    tpu.vector_store %arg6[%c0_92, %c0_93, %c13, %c0_94], %242 {strides = array<i32>} : memref<1x8x16x32xf32, #tpu.memory_space<vmem>>, vector<1x8x1x32xf32>,
    %243 = vector.extract_strided_slice %1 {offsets = [0, 7, 0], sizes = [4, 1, 16], strides = [1, 1, 1]} : vector<4x8x16xf32> to vector<4x1x16xf32>
    %244 = vector.shape_cast %243 : vector<4x1x16xf32> to vector<4x16xf32>
    %245 = vector.extract_strided_slice %3 {offsets = [0, 0, 0], sizes = [1, 16, 32], strides = [1, 1, 1]} : vector<2x16x32xf32> to vector<1x16x32xf32>
    %246 = vector.shape_cast %245 : vector<1x16x32xf32> to vector<16x32xf32>
    %cst_95 = arith.constant dense<0.000000e+00> : vector<4x32xf32>
    %247 = tpu.matmul %244, %246, %cst_95 {dimension_numbers = #tpu.dot_dimension_numbers<[1], [0], [0], [1], [0, 0, 1, 1], [], []>} : vector<4x16xf32>, vector<16x32xf32>, vector<4x32xf32> -> vector<4x32xf32>
    %248 = vector.extract_strided_slice %3 {offsets = [1, 0, 0], sizes = [1, 16, 32], strides = [1, 1, 1]} : vector<2x16x32xf32> to vector<1x16x32xf32>
    %249 = vector.shape_cast %248 : vector<1x16x32xf32> to vector<16x32xf32>
    %cst_96 = arith.constant dense<0.000000e+00> : vector<4x32xf32>
    %250 = tpu.matmul %244, %249, %cst_96 {dimension_numbers = #tpu.dot_dimension_numbers<[1], [0], [0], [1], [0, 0, 1, 1], [], []>} : vector<4x16xf32>, vector<16x32xf32>, vector<4x32xf32> -> vector<4x32xf32>
    %251 = vector.extract_strided_slice %2 {offsets = [0, 0, 0], sizes = [1, 8, 4], strides = [1, 1, 1]} : vector<4x8x4xf32> to vector<1x8x4xf32>
    %252 = vector.shape_cast %251 : vector<1x8x4xf32> to vector<8x4xf32>
    %cst_97 = arith.constant dense<0.000000e+00> : vector<8x32xf32>
    %253 = tpu.matmul %252, %247, %cst_97 {dimension_numbers = #tpu.dot_dimension_numbers<[1], [0], [0], [1], [0, 0, 1, 1], [], []>} : vector<8x4xf32>, vector<4x32xf32>, vector<8x32xf32> -> vector<8x32xf32>
    %254 = vector.extract_strided_slice %2 {offsets = [1, 0, 0], sizes = [1, 8, 4], strides = [1, 1, 1]} : vector<4x8x4xf32> to vector<1x8x4xf32>
    %255 = vector.shape_cast %254 : vector<1x8x4xf32> to vector<8x4xf32>
    %cst_98 = arith.constant dense<0.000000e+00> : vector<8x32xf32>
    %256 = tpu.matmul %255, %250, %cst_98 {dimension_numbers = #tpu.dot_dimension_numbers<[1], [0], [0], [1], [0, 0, 1, 1], [], []>} : vector<8x4xf32>, vector<4x32xf32>, vector<8x32xf32> -> vector<8x32xf32>
    %257 = arith.addf %253, %256 : vector<8x32xf32>
    %258 = vector.broadcast %4 : vector<8x1xf32> to vector<8x32xf32>
    %259 = arith.addf %257, %258 : vector<8x32xf32>
    %260 = vector.extract_strided_slice %2 {offsets = [2, 0, 0], sizes = [1, 8, 4], strides = [1, 1, 1]} : vector<4x8x4xf32> to vector<1x8x4xf32>
    %261 = vector.shape_cast %260 : vector<1x8x4xf32> to vector<8x4xf32>
    %cst_99 = arith.constant dense<0.000000e+00> : vector<8x32xf32>
    %262 = tpu.matmul %261, %247, %cst_99 {dimension_numbers = #tpu.dot_dimension_numbers<[1], [0], [0], [1], [0, 0, 1, 1], [], []>} : vector<8x4xf32>, vector<4x32xf32>, vector<8x32xf32> -> vector<8x32xf32>
    %263 = vector.extract_strided_slice %2 {offsets = [3, 0, 0], sizes = [1, 8, 4], strides = [1, 1, 1]} : vector<4x8x4xf32> to vector<1x8x4xf32>
    %264 = vector.shape_cast %263 : vector<1x8x4xf32> to vector<8x4xf32>
    %cst_100 = arith.constant dense<0.000000e+00> : vector<8x32xf32>
    %265 = tpu.matmul %264, %250, %cst_100 {dimension_numbers = #tpu.dot_dimension_numbers<[1], [0], [0], [1], [0, 0, 1, 1], [], []>} : vector<8x4xf32>, vector<4x32xf32>, vector<8x32xf32> -> vector<8x32xf32>
    %266 = arith.addf %262, %265 : vector<8x32xf32>
    %267 = vector.broadcast %4 : vector<8x1xf32> to vector<8x32xf32>
    %268 = arith.addf %266, %267 : vector<8x32xf32>
    %269 = vector.shape_cast %259 : vector<8x32xf32> to vector<8x1x32xf32>
    %c0_101 = arith.constant 0 : index
    %c0_102 = arith.constant 0 : index
    %c14 = arith.constant 14 : index
    %c0_103 = arith.constant 0 : index
    %270 = vector.load %arg6[%c0_101, %c0_102, %c14, %c0_103] : memref<1x8x16x32xf32, #tpu.memory_space<vmem>>, vector<1x8x1x32xf32>
    %271 = vector.shape_cast %270 : vector<1x8x1x32xf32> to vector<8x1x32xf32>
    %272 = vector.shape_cast %269 : vector<8x1x32xf32> to vector<1x8x1x32xf32>
    tpu.vector_store %arg6[%c0_101, %c0_102, %c14, %c0_103], %272 {strides = array<i32>} : memref<1x8x16x32xf32, #tpu.memory_space<vmem>>, vector<1x8x1x32xf32>,
    %273 = vector.shape_cast %268 : vector<8x32xf32> to vector<8x1x32xf32>
    %c0_104 = arith.constant 0 : index
    %c0_105 = arith.constant 0 : index
    %c15 = arith.constant 15 : index
    %c0_106 = arith.constant 0 : index
    %274 = vector.load %arg6[%c0_104, %c0_105, %c15, %c0_106] : memref<1x8x16x32xf32, #tpu.memory_space<vmem>>, vector<1x8x1x32xf32>
    %275 = vector.shape_cast %274 : vector<1x8x1x32xf32> to vector<8x1x32xf32>
    %276 = vector.shape_cast %273 : vector<8x1x32xf32> to vector<1x8x1x32xf32>
    tpu.vector_store %arg6[%c0_104, %c0_105, %c15, %c0_106], %276 {strides = array<i32>} : memref<1x8x16x32xf32, #tpu.memory_space<vmem>>, vector<1x8x1x32xf32>,
    return
  }
  func.func @transform_0(%arg0: i32, %arg1: i32) -> (i32, i32, i32, i32) {
    %c0_i32 = arith.constant 0 : i32
    %c0_i32_0 = arith.constant 0 : i32
    %c0_i32_1 = arith.constant 0 : i32
    return %arg0, %c0_i32, %arg1, %c0_i32_0 : i32, i32, i32, i32
  }
  func.func @transform_1(%arg0: i32, %arg1: i32) -> (i32, i32, i32) {
    %c0_i32 = arith.constant 0 : i32
    %c0_i32_0 = arith.constant 0 : i32
    %c0_i32_1 = arith.constant 0 : i32
    %c0_i32_2 = arith.constant 0 : i32
    return %c0_i32, %c0_i32_0, %c0_i32_1 : i32, i32, i32
  }
  func.func @transform_2(%arg0: i32, %arg1: i32) -> (i32, i32, i32) {
    %c0_i32 = arith.constant 0 : i32
    %c0_i32_0 = arith.constant 0 : i32
    %c0_i32_1 = arith.constant 0 : i32
    %c0_i32_2 = arith.constant 0 : i32
    return %c0_i32, %c0_i32_0, %c0_i32_1 : i32, i32, i32
  }
  func.func @transform_3(%arg0: i32, %arg1: i32) -> (i32, i32) {
    %c0_i32 = arith.constant 0 : i32
    %c0_i32_0 = arith.constant 0 : i32
    %c0_i32_1 = arith.constant 0 : i32
    return %c0_i32, %c0_i32_0 : i32, i32
  }
  func.func @transform_4(%arg0: i32, %arg1: i32) -> (i32, i32, i32, i32) {
    %c0_i32 = arith.constant 0 : i32
    %c0_i32_0 = arith.constant 0 : i32
    %c0_i32_1 = arith.constant 0 : i32
    return %arg0, %c0_i32, %arg1, %c0_i32_0 : i32, i32, i32, i32
  }
}

</mosaic_0001>

<bundles_post_ra>
// kernel: tpu_custom_call.1
= control target key start
LH: loop header
LB: loop body
LE: loop exit
PB: predicated region body
PF: predicated region fallthrough
CT: control target
= control target key end

     0   :  { %9 = vsyncpa [#allocation3], 0  ;;  %s6695_s0 = inlined_call_operand.hbm [shape: f32[2,4,16,16], index: 0, kind: input, shape index: {}]   ;;  %s6696_s1 = inlined_call_operand.vmem [shape: f32[4,8,4], index: 1, kind: input, shape index: {}]   ;;  %s6697_s2 = inlined_call_operand.vmem [shape: f32[2,16,32], index: 2, kind: input, shape index: {}]   ;;  %s6698_s3 = inlined_call_operand.vmem [shape: f32[8,1], index: 3, kind: input, shape index: {}]   ;;  %s6699_s4 = inlined_call_operand.hbm [shape: f32[2,8,32,32], index: 4, kind: output, shape index: {}]  }
   0x1   :  { %11 = vsyncpa [#allocation3 + $0x1], 0 }
   0x2   :  { %12 = vsyncpa [#allocation4], 0 }
   0x3   :  { %14 = vsyncpa [#allocation4 + $0x1], 0  ;;  %s5736_s15 = smov 0   ;;  %s5738_s16 = smov 0  }
   0x4   :  { %s5740_s17 = smov 0   ;;  %s5742_s18 = smov 0  }
   0x5   :  { %s5744_s19 = smov 0   ;;  %s5746_s20 = smov 0  }
   0x6   :  { %s5748_s21 = smov 0   ;;  %s5750_s22 = smov 0  }
   0x7 LB: > { %s4957_s23 = sadd.s32 4294967295, %s5693_s22   ;;  %s4958_s24 = sadd.s32 4294967294, %s5693_s22   ;;  %s5693_s22 = sphi %s5750_s22, %s20_s22   ;;  %s5689_s21 = sphi %s5748_s21, %s6720_s21   ;;  %s5685_s20 = sphi %s5746_s20, %s6719_s20   ;;  %s5681_s19 = sphi %s5744_s19, %s6718_s19   ;;  %s5677_s18 = sphi %s5742_s18, %s6717_s18   ;;  %s5673_s17 = sphi %s5740_s17, %s6716_s17   ;;  %s5669_s16 = sphi %s5738_s16, %s6715_s16   ;;  %s5665_s15 = sphi %s5736_s15, %s6714_s15  }
   0x8   : > { %s29_s25 = sadd.s32 1, %s5685_s20  ;;  %s32_s26 = sadd.s32 1, %s5689_s21 }
   0x9   : > { %p30_p0 = scmp.ge.s32.totalorder %s29_s25, 2  ;;  %s41_s27 = sadd.s32 1, %s5673_s17 }
   0xa   : > { %p48_p1 = scmp.ne.s32.totalorder %s5673_s17, %s5669_s16  ;;  %p49_p2 = scmp.eq.s32.totalorder %s5693_s22, 0 }
   0xb   : > { %s6722_s25 = smov (%p30_p0, %s29_s25), 0  ;;  %s6724_s26 = smov (!%p30_p0, %s32_s26), %s5689_s21 }
   0xc   : > { %6703 = sst [smem:[#allocation10_spill]] %s6722_s25  ;;  %s37_s28 = ssub.s32 %s5685_s20, %s6722_s25 }
   0xd   : > { %p5789_p3 = por %p49_p2, %p48_p1  ;;  %p34_p4 = scmp.ge.s32.totalorder %s6724_s26, 2 }
   0xe   : > { %p54_p5 = scmp.ne.s32.totalorder %s5669_s16, %s5665_s15  ;;  %p55_p6 = scmp.eq.s32.totalorder %s4957_s23, 0 }
   0xf   : > { %p143_p7 = scmp.eq.s32.totalorder %s4957_s23, 3  ;;  %s6726_s26 = smov (%p34_p4, %s6724_s26), 0 }
  0x10   : > { %6705 = sst [smem:[#allocation11_spill]] %s6726_s26  ;;  %p5797_p8 = por %p55_p6, %p54_p5 }
  0x11   : > { %p5801_p9 = por %p143_p7, %p48_p1  ;;  %s36_s6 = ssub.s32 %s5689_s21, %s6726_s26 }
  0x12   : > { %p149_p10 = scmp.eq.s32.totalorder %s4958_s24, 3  ;;  %s38_s7 = sor.u32 %s37_s28, %s36_s6 }
  0x13   : > { %s6707_s5 = scalar_select %p5801_p9, 1, 0 }
  0x14   : > { %p39_p11 = scmp.eq.s32.totalorder %s38_s7, 0  ;;  %p5807_p12 = por %p149_p10, %p54_p5 }
  0x15   : > { %p5503_p13 = scmp.lt.s32.totalorder %s5693_s22, 4  ;;  %s178_s9 = sand.u32 1, %s5673_s17  }
  0x16   : > { %s6708_s8 = scalar_select %p5807_p12, 1, 0 }
  0x17   : > { %s5814_s10 = scalar_select %p39_p11, %s5673_s17, %s41_s27  }
  0x18   : > { %s4961_s11 = sshll.u32 %s178_s9, 5  ;;  %s4962_s12 = sshll.u32 %s5689_s21, 3 }
  0x19   : > { %s187_s13 = sadd.s32 %s5685_s20, %s4962_s12  ;;  %s182_s14 = scalar_lea.vmem [#allocation2], %s4961_s11 }
  0x1a   : > { %s190_s23 = sshll.u32 %s182_s14, 4  ;;  %s4963_s25 = sshll.u32 %s187_s13, 7  ;;  %s5818_s23 = int_to_ptr.vmem [resolvable:$true] %s190_s23 }
  0x1b   : > { %s5823_s28 = scalar_lea.hbm %s6695_s0, %s4963_s25  ;;  %p5827_p0 = pnand %p5503_p13, %p5789_p3 }
  0x1c   : > { %s5831_s6 = scalar_lea.sflag [#allocation3], %s178_s9  ;;  %s5593_s7 = scalar_lea.hbm %s5823_s28, 512 }
  0x1d   : > { %p5594_p1 = scmp.ne.s32.totalorder %s5823_s28, %s5593_s7  ;;  %p5595_p2 = pneg %p5827_p0 }
  0x1e   : > { %s5598_s29 = scalar_lea.hbm %s6695_s0, 2048  ;;  %p5599_p3 = scmp.lt.u32.totalorder %s5823_s28, %s6695_s0 }
  0x1f   : > { %p5596_p4 = pnand %p5595_p2, %p5594_p1  ;;  %p5600_p6 = scmp.lt.u32.totalorder %s5598_s29, %s5593_s7 }
  0x20   : > { %p5602_p10 = scmp.lt.u32.totalorder %s5593_s7, %s5823_s28 }
  0x21   : > { %p5597_p5 = pneg %p5596_p4  ;;  %p5601_p7 = por %p5600_p6, %p5599_p3 }
  0x23   : > { %p5603_p11 = por %p5602_p10, %p5601_p7 }
  0x25   : > { %p5604_p13 = pnand %p5603_p11, %p5597_p5 }
  0x27   : > { %5607 = shalt.err (!%p5604_p13)
}
  0x28   : > { %s5608_s9 = scalar_lea.vmem %s5818_s23, 512  ;;  %s5695_s13 = smov [#allocation2]  }
  0x29   : > { %p5609_p1 = scmp.ne.s32.totalorder %s5818_s23, %s5608_s9  ;;  %s5613_s14 = sshll.u32 %s5695_s13, 4  ;;  %s5614_s14 = int_to_ptr.vmem [resolvable:$false] %s5613_s14 }
  0x2a   : > { %s5615_s24 = scalar_lea.vmem %s5614_s14, 1024  ;;  %p5616_p9 = scmp.lt.s32.totalorder %s5818_s23, %s5614_s14 }
  0x2b   : > { %p5611_p4 = pnand %p5609_p1, %p5595_p2  ;;  %p5617_p3 = scmp.lt.s32.totalorder %s5615_s24, %s5608_s9 }
  0x2d   : > { %p5612_p12 = pneg %p5611_p4  ;;  %p5618_p6 = por %p5617_p3, %p5616_p9 }
  0x2f   : > { %p5619_p7 = pnand %p5618_p6, %p5612_p12 }
  0x31   : > { %5622 = shalt.err (!%p5619_p7)
}
  0x32   : > { %s5696_s7 = smov 256   ;;  %s5697_s25 = smov 128  }
  0x33   : > { %s5698_s26 = smov 8   ;;  %p4964_p2 = scmp.ge.s32.totalorder %s5693_s22, 1 }
  0x34   : > { %5498 = dma.hbm_to_vmem [thread:$0]  (!%p5827_p0), %s5823_s28, 512, %s5818_s23, %s5831_s6, %s5696_s7, %s5697_s25, %s5698_s26  }
  0x35   : > { %p198_p5 = scmp.lt.s32.totalorder %s5693_s22, 5 }
  0x37   : > { %p199_p10 = pnand %p4964_p2, %p198_p5 }
  0x38   : > { %s5862_s29 = sand.u32 (!%p199_p10), 1, %s5669_s16  }
  0x39   : > { %202 = sbr.rel (%p199_p10) target bundleno = 2093 (0x82d), region = 36  ;;  %s4965_s11 = sshll.u32 (!%p199_p10), %s5862_s29, 5 }
  0x3a   : > { %s205_s12 = scalar_lea.sflag (!%p199_p10), [#allocation3], %s5862_s29  ;;  %s5866_s9 = scalar_lea.vmem (!%p199_p10), [#allocation2], %s4965_s11 }
  0x40   : > { %5656 = dma.done.wait (%p5797_p8), %s205_s12, 512  }
  0x41   : > { %5658 = vsyncadd (%p5797_p8), %s205_s12, 4294966784  ;;  %v5699_v0 = vmov 0.0|0.0   ;;  %vm5700_vm0 = vmmov 0   ;;  %v5701_v1 = vmov 0.0   ;;  %v242_v2 = vld [vmem:[%s6697_s2] sm:$0xff]  ;;  %v243_v3 = vld [vmem:[%s6697_s2 + $0x8] sm:$0xff]  ;;  %v715_v36 = vlaneseq }
  0x42   : > { %5437 = vmatprep.subr.bf16.mxu0 %v5699_v0  ;;  %5440 = vmatprep.subr.bf16.mxu1 %v5699_v0  ;;  %v244_v4 = vld [vmem:[%s6697_s2 + $0x10] sm:$0xff]  ;;  %v5887_v5 = vpack.c.bf16 %v243_v3, %v242_v2  ;;  %v245_v6 = vld [vmem:[%s6697_s2 + $0x18] sm:$0xff]  ;;  %v5893_v7 = vld [vmem:[%s5866_s9] sm:$0xff]  ;;  %vm252_vm1 = vcmask 1041409   ;;  %vm255_vm2 = vcmask 1042434   ;;  %vm258_vm3 = vcmask 1043459  }
  0x43   : > { %5169 = vmatprep.mubr.msk.f32.mxu0 %vm5700_vm0, %v5701_v1  ;;  %5176 = vmatprep.mubr.msk.f32.mxu1 %vm5700_vm0, %v5701_v1  ;;  %v5896_v8 = vld [vmem:[%s5866_s9 + $0x8] sm:$0xff]  ;;  %v5898_v9 = vpack.c.bf16 %v245_v6, %v244_v4  ;;  %v5901_v10 = vld [vmem:[%s5866_s9 + $0x10] sm:$0xff]  ;;  %v5904_v11 = vld [vmem:[%s5866_s9 + $0x18] sm:$0xff]  ;;  %vm260_vm4 = vcmask 130048   ;;  %v5702_v19 = vmov 0   ;;  %vm407_vm5 = vcmask 1043456  }
  0x44   : > { %v251_v12 = vrot.slane %v5896_v8, 7  ;;  %5439 = vmatpush3.bf16.msra.mxu0 %v5887_v5  ;;  %v254_v13 = vrot.slane %v5901_v10, 6  ;;  %v257_v14 = vrot.slane %v5904_v11, 5  ;;  %v246_v18 = vld [vmem:[%s6698_s3] sm:$0xff]  ;;  %5584 = vset.pattern.permute.xlu0 %v5702_v19  ;;  %v843_v20 = vrot.slane %v5893_v7, 1  ;;  %v5930_v21 = vld [vmem:[%s6696_s1 + $0x8] sm:$0xff] }
  0x45   : > { %5442 = vmatpush3.bf16.msra.mxu1 %v5898_v9  ;;  %5179 = vmatprep.subr.mxu0 %v5701_v1  ;;  %vm403_vm6 = vcmask 31744   ;;  %v5935_v22 = vld [vmem:[%s6696_s1] sm:$0xff]  ;;  %v845_v27 = vrot.slane %v5901_v10, 7  ;;  %v5951_v29 = vld [vmem:[%s6696_s1 + $0x18] sm:$0xff]  ;;  %v5956_v30 = vld [vmem:[%s6696_s1 + $0x10] sm:$0xff]  ;;  %v847_v31 = vrot.slane %v5904_v11, 6 }
  0x46   : > { %v253_v15 = vsel %vm252_vm1, %v251_v12, %v5893_v7  ;;  %5184 = vmatprep.subr.mxu1 %v5701_v1  ;;  %559 = vperm.xlu0 %5584, %v246_v18   ;;  %v844_v28 = vsel %vm252_vm1, %v5896_v8, %v843_v20  ;;  %v5703_v34 = vmov 1966171168   ;;  %v716_v38 = vshrl.u32 %v715_v36, 7  ;;  %s4966_s13 = sshll.u32 %s5862_s29, 7  ;;  %s4824_s30 = scalar_lea.sflag [#allocation4], %s5862_s29 }
  0x47   : > { %v256_v16 = vsel %vm255_vm2, %v254_v13, %v253_v15  ;;  %v846_v32 = vsel %vm255_vm2, %v845_v27, %v844_v28  ;;  %v713_v35 = vunpack.c.l.s4 %v5703_v34  ;;  %vm768_vm7 = vcmask 253952   ;;  %s6001_s14 = scalar_lea.vmem [#allocation5], %s4966_s13 }
  0x48   : > { %v259_v17 = vsel %vm258_vm3, %v257_v14, %v256_v16  ;;  %v848_v33 = vsel %vm258_vm3, %v847_v31, %v846_v32  ;;  %v1411_v54 = vrot.slane %v5893_v7, 2  ;;  %v1412_v55 = vrot.slane %v5896_v8, 1 }
  0x49   : > { %5170 = vmatmul.mubr.msk.f32.vlgmr.msra.gmra.mrb[0].mxu0 %vm260_vm4, %v259_v17  ;;  %5177 = vmatmul.mubr.msk.f32.vlgmr.msra.gmra.mrb[0].mxu1 %vm260_vm4, %v259_v17  ;;  %v714_v37 = vunpack.c.0.s8 %v713_v35 }
  0x4a   : > { %5181 = vmatprep.mubr.msk.f32.mxu0 %vm5700_vm0, %v5701_v1  ;;  %5186 = vmatprep.mubr.msk.f32.mxu1 %vm5700_vm0, %v5701_v1  ;;  %v1413_v14 = vsel %vm252_vm1, %v1412_v55, %v1411_v54 }
  0x4b   : > { %v5989_v45 = vsub.s32 %v714_v37, %v716_v38 }
  0xc5   : > { %v5987_v39 = vpop.permute.xlu0 %559 }
 0x11c   : > { %v329_v23 = vpop.f32.mrb[0].mxu0  ;;  %v399_v24 = vpop.f32.mrb[0].mxu1 }
 0x11d   : > { %v5171_v25 = vpop.f32.mrb[1].mxu0  ;;  %v5178_v26 = vpop.f32.mrb[1].mxu1  ;;  %5180 = vmatpush3.msk.msra.mxu0 %vm407_vm5, %v399_v24  ;;  %5185 = vmatpush3.msk.msra.mxu1 %vm407_vm5, %v329_v23 }
 0x11e   : > { %5182 = vmatmul.mubr.msk.f32.vlgmr.msra.gmra.mrb[2].mxu0 %vm403_vm6, %v5930_v21  ;;  %5187 = vmatmul.mubr.msk.f32.vlgmr.msra.gmra.mrb[2].mxu1 %vm403_vm6, %v5935_v22  ;;  %v1415_v25 = vrot.slane %v5904_v11, 7 }
 0x11f   : > { %5189 = vmatprep.subr.mxu0 %v5701_v1  ;;  %5194 = vmatprep.subr.mxu1 %v5701_v1 }
 0x120   : > { %5190 = vmatpush3.msk.msra.mxu0 %vm407_vm5, %v399_v24  ;;  %5195 = vmatpush3.msk.msra.mxu1 %vm407_vm5, %v329_v23  ;;  %v1414_v24 = vsel %vm255_vm2, %v5901_v10, %v1413_v14 }
 0x121   : > { %5191 = vmatprep.mubr.msk.f32.mxu0 %vm5700_vm0, %v5701_v1  ;;  %5196 = vmatprep.mubr.msk.f32.mxu1 %vm5700_vm0, %v5701_v1  ;;  %v1416_v35 = vsel %vm258_vm3, %v1415_v25, %v1414_v24 }
 0x122   : > { %5192 = vmatmul.mubr.msk.f32.vlgmr.msra.gmra.mrb[4].mxu0 %vm403_vm6, %v5951_v29  ;;  %5197 = vmatmul.mubr.msk.f32.vlgmr.msra.gmra.mrb[4].mxu1 %vm403_vm6, %v5956_v30 }
 0x123   : > { %5443 = vmatprep.subr.bf16.mxu0 %v5699_v0  ;;  %5446 = vmatprep.subr.bf16.mxu1 %v5699_v0 }
 0x124   : > { %5445 = vmatpush3.bf16.msra.mxu0 %v5887_v5  ;;  %5448 = vmatpush3.bf16.msra.mxu1 %v5898_v9 }
 0x125   : > { %5203 = vmatprep.mubr.msk.f32.mxu0 %vm5700_vm0, %v5701_v1  ;;  %5210 = vmatprep.mubr.msk.f32.mxu1 %vm5700_vm0, %v5701_v1 }
 0x126   : > { %5213 = vmatprep.subr.mxu0 %v5701_v1  ;;  %5218 = vmatprep.subr.mxu1 %v5701_v1 }
 0x127   : > { %5204 = vmatmul.mubr.msk.f32.vlgmr.msra.gmra.mrb[6].mxu0 %vm260_vm4, %v848_v33  ;;  %5211 = vmatmul.mubr.msk.f32.vlgmr.msra.gmra.mrb[6].mxu1 %vm260_vm4, %v848_v33 }
 0x128   : > { %5215 = vmatprep.mubr.msk.f32.mxu0 %vm5700_vm0, %v5701_v1  ;;  %5220 = vmatprep.mubr.msk.f32.mxu1 %vm5700_vm0, %v5701_v1 }
 0x1f1   : > { %v477_v40 = vpop.f32.mrb[2].mxu0  ;;  %v553_v41 = vpop.f32.mrb[2].mxu1 }
 0x1f2   : > { %v554_v42 = vadd.f32 %v553_v41, %v477_v40  ;;  %v5183_v43 = vpop.f32.mrb[3].mxu0  ;;  %v5188_v44 = vpop.f32.mrb[3].mxu1 }
 0x1f4   : > { %v562_v46 = vadd.f32 %v5987_v39, %v554_v42 }
 0x1f5   : > { %v632_v47 = vpop.f32.mrb[4].mxu0  ;;  %v705_v48 = vpop.f32.mrb[4].mxu1 }
 0x1f6   : > { %v711_v49 = vcombine.high %v562_v46, %v562_v46  ;;  %v718_v50 = vrot.slane %v562_v46, %v5989_v45  ;;  %v706_v51 = vadd.f32 %v705_v48, %v632_v47  ;;  %v5193_v52 = vpop.f32.mrb[5].mxu0  ;;  %v5198_v53 = vpop.f32.mrb[5].mxu1 }
 0x1f7   : > { %v1979_v52 = vrot.slane %v5893_v7, 3  ;;  %v1980_v53 = vrot.slane %v5896_v8, 2 }
 0x1f8   : > { %v725_v56 = vrot.slane %v711_v49, %v5989_v45  ;;  %v726_v57 = vcombine.high %v718_v50, %v718_v50  ;;  %v734_v58 = vrot.slane %v718_v50, %v5989_v45  ;;  %v709_v59 = vadd.f32 %v706_v51, %v5987_v39 }
 0x1fa   : > { %v727_v60 = vcombine.high %v725_v56, %v725_v56  ;;  %v741_v61 = vrot.slane %v725_v56, %v5989_v45  ;;  %v748_v62 = vrot.slane %v726_v57, %v5989_v45  ;;  %v756_v63 = vcombine.high %v734_v58, %v734_v58  ;;  %769 = vst.msk [vmem:[%s6001_s14] sm:$0x1] %vm768_vm7, %v734_v58  ;;  %v917_v2 = vpop.f32.mrb[6].mxu0  ;;  %v987_v3 = vpop.f32.mrb[6].mxu1 }
 0x1fb   : > { %v778_v4 = vcombine.high %v709_v59, %v709_v59  ;;  %v785_v6 = vrot.slane %v709_v59, %v5989_v45  ;;  %v5205_v12 = vpop.f32.mrb[7].mxu0  ;;  %v5212_v13 = vpop.f32.mrb[7].mxu1  ;;  %5214 = vmatpush3.msk.msra.mxu0 %vm407_vm5, %v987_v3  ;;  %5219 = vmatpush3.msk.msra.mxu1 %vm407_vm5, %v917_v2 }
 0x1fc   : > { %v755_v15 = vrot.slane %v727_v60, %v5989_v45  ;;  %v757_v16 = vcombine.high %v741_v61, %v741_v61  ;;  %v758_v17 = vcombine.high %v748_v62, %v748_v62  ;;  %770 = vst.msk [vmem:[%s6001_s14 + $0x10] sm:$0x1] %vm768_vm7, %v748_v62  ;;  %771 = vst.msk [vmem:[%s6001_s14 + $0x20] sm:$0x1] %vm768_vm7, %v756_v63  ;;  %5216 = vmatmul.mubr.msk.f32.vlgmr.msra.gmra.mrb[8].mxu0 %vm403_vm6, %v5930_v21 }
 0x1fd   : > { %773 = vst.msk [vmem:[%s6001_s14 + $0x40] sm:$0x1] %vm768_vm7, %v741_v61  ;;  %5221 = vmatmul.mubr.msk.f32.vlgmr.msra.gmra.mrb[8].mxu1 %vm403_vm6, %v5935_v22  ;;  %v792_v18 = vrot.slane %v778_v4, %v5989_v45  ;;  %v793_v19 = vcombine.high %v785_v6, %v785_v6  ;;  %v801_v20 = vrot.slane %v785_v6, %v5989_v45 }
 0x1fe   : > { %5223 = vmatprep.subr.mxu0 %v5701_v1  ;;  %5228 = vmatprep.subr.mxu1 %v5701_v1  ;;  %v759_v23 = vcombine.high %v755_v15, %v755_v15  ;;  %772 = vst.msk [vmem:[%s6001_s14 + $0x30] sm:$0x1] %vm768_vm7, %v758_v17  ;;  %774 = vst.msk [vmem:[%s6001_s14 + $0x50] sm:$0x1] %vm768_vm7, %v755_v15  ;;  %v1981_v6 = vsel %vm252_vm1, %v1980_v53, %v1979_v52 }
 0x1ff   : > { %775 = vst.msk [vmem:[%s6001_s14 + $0x60] sm:$0x1] %vm768_vm7, %v757_v16  ;;  %5224 = vmatpush3.msk.msra.mxu0 %vm407_vm5, %v987_v3  ;;  %5229 = vmatpush3.msk.msra.mxu1 %vm407_vm5, %v917_v2  ;;  %v794_v26 = vcombine.high %v792_v18, %v792_v18  ;;  %v808_v27 = vrot.slane %v792_v18, %v5989_v45  ;;  %835 = vst.msk [vmem:[%s6001_s14 + $0x1] sm:$0x1] %vm768_vm7, %v801_v20  ;;  %v1982_v16 = vrot.slane %v5901_v10, 1 }
 0x200   : > { %v815_v28 = vrot.slane %v793_v19, %v5989_v45  ;;  %v823_v31 = vcombine.high %v801_v20, %v801_v20  ;;  %5225 = vmatprep.mubr.msk.f32.mxu0 %vm5700_vm0, %v5701_v1  ;;  %776 = vst.msk [vmem:[%s6001_s14 + $0x70] sm:$0x1] %vm768_vm7, %v759_v23  ;;  %5230 = vmatprep.mubr.msk.f32.mxu1 %vm5700_vm0, %v5701_v1 }
 0x201   : > { %5226 = vmatmul.mubr.msk.f32.vlgmr.msra.gmra.mrb[10].mxu0 %vm403_vm6, %v5951_v29  ;;  %v822_v32 = vrot.slane %v794_v26, %v5989_v45  ;;  %v824_v33 = vcombine.high %v808_v27, %v808_v27  ;;  %839 = vst.msk [vmem:[%s6001_s14 + $0x41] sm:$0x1] %vm768_vm7, %v808_v27  ;;  %5231 = vmatmul.mubr.msk.f32.vlgmr.msra.gmra.mrb[10].mxu1 %vm403_vm6, %v5956_v30 }
 0x202   : > { %v825_v34 = vcombine.high %v815_v28, %v815_v28  ;;  %836 = vst.msk [vmem:[%s6001_s14 + $0x11] sm:$0x1] %vm768_vm7, %v815_v28  ;;  %837 = vst.msk [vmem:[%s6001_s14 + $0x21] sm:$0x1] %vm768_vm7, %v823_v31  ;;  %5449 = vmatprep.subr.bf16.mxu0 %v5699_v0  ;;  %5452 = vmatprep.subr.bf16.mxu1 %v5699_v0  ;;  %v1983_v27 = vsel %vm255_vm2, %v1982_v16, %v1981_v6 }
 0x203   : > { %5451 = vmatpush3.bf16.msra.mxu0 %v5887_v5  ;;  %v826_v36 = vcombine.high %v822_v32, %v822_v32  ;;  %840 = vst.msk [vmem:[%s6001_s14 + $0x51] sm:$0x1] %vm768_vm7, %v822_v32  ;;  %841 = vst.msk [vmem:[%s6001_s14 + $0x61] sm:$0x1] %vm768_vm7, %v824_v33  ;;  %5454 = vmatpush3.bf16.msra.mxu1 %v5898_v9 }
 0x204   : > { %838 = vst.msk [vmem:[%s6001_s14 + $0x31] sm:$0x1] %vm768_vm7, %v825_v34  ;;  %5237 = vmatprep.mubr.msk.f32.mxu0 %vm5700_vm0, %v5701_v1  ;;  %5244 = vmatprep.mubr.msk.f32.mxu1 %vm5700_vm0, %v5701_v1  ;;  %v1984_v34 = vsel %vm258_vm3, %v5904_v11, %v1983_v27 }
 0x205   : > { %5247 = vmatprep.subr.mxu0 %v5701_v1  ;;  %842 = vst.msk [vmem:[%s6001_s14 + $0x71] sm:$0x1] %vm768_vm7, %v826_v36  ;;  %5252 = vmatprep.subr.mxu1 %v5701_v1 }
 0x206   : > { %5238 = vmatmul.mubr.msk.f32.vlgmr.msra.gmra.mrb[12].mxu0 %vm260_vm4, %v1416_v35  ;;  %5245 = vmatmul.mubr.msk.f32.vlgmr.msra.gmra.mrb[12].mxu1 %vm260_vm4, %v1416_v35 }
 0x207   : > { %5249 = vmatprep.mubr.msk.f32.mxu0 %vm5700_vm0, %v5701_v1  ;;  %5254 = vmatprep.mubr.msk.f32.mxu1 %vm5700_vm0, %v5701_v1 }
 0x2cf   : > { %v1060_v37 = vpop.f32.mrb[8].mxu0 }
 0x2d0   : > { %v1133_v38 = vpop.f32.mrb[8].mxu1  ;;  %v5217_v41 = vpop.f32.mrb[9].mxu0 }
 0x2d1   : > { %v1134_v40 = vadd.f32 %v1133_v38, %v1060_v37  ;;  %v5222_v42 = vpop.f32.mrb[9].mxu1 }
 0x2d3   : > { %v1137_v43 = vadd.f32 %v1134_v40, %v5987_v39 }
 0x2d4   : > { %v1204_v44 = vpop.f32.mrb[10].mxu0  ;;  %v1274_v48 = vpop.f32.mrb[10].mxu1 }
 0x2d5   : > { %v1280_v46 = vcombine.high %v1137_v43, %v1137_v43  ;;  %v1287_v47 = vrot.slane %v1137_v43, %v5989_v45  ;;  %v5227_v49 = vpop.f32.mrb[11].mxu0  ;;  %v1275_v50 = vadd.f32 %v1274_v48, %v1204_v44  ;;  %v5232_v51 = vpop.f32.mrb[11].mxu1 }
 0x2d6   : > { %v2548_v51 = vrot.slane %v5896_v8, 3 }
 0x2d7   : > { %v1294_v54 = vrot.slane %v1280_v46, %v5989_v45  ;;  %v1295_v55 = vcombine.high %v1287_v47, %v1287_v47  ;;  %v1303_v56 = vrot.slane %v1287_v47, %v5989_v45  ;;  %v1278_v57 = vadd.f32 %v1275_v50, %v5987_v39 }
 0x2d8   : > { %v2547_v50 = vrot.slane %v5893_v7, 4 }
 0x2d9   : > { %v1296_v58 = vcombine.high %v1294_v54, %v1294_v54  ;;  %v1310_v59 = vrot.slane %v1294_v54, %v5989_v45  ;;  %v1317_v60 = vrot.slane %v1295_v55, %v5989_v45  ;;  %v1325_v61 = vcombine.high %v1303_v56, %v1303_v56  ;;  %1337 = vst.msk [vmem:[%s6001_s14 + $0x2] sm:$0x1] %vm768_vm7, %v1303_v56  ;;  %v1485_v62 = vpop.f32.mrb[12].mxu0  ;;  %v1555_v3 = vpop.f32.mrb[12].mxu1 }
 0x2da   : > { %v1346_v63 = vcombine.high %v1278_v57, %v1278_v57  ;;  %v1353_v2 = vrot.slane %v1278_v57, %v5989_v45  ;;  %v5239_v4 = vpop.f32.mrb[13].mxu0  ;;  %5253 = vmatpush3.msk.msra.mxu1 %vm407_vm5, %v1485_v62  ;;  %v5246_v15 = vpop.f32.mrb[13].mxu1  ;;  %5248 = vmatpush3.msk.msra.mxu0 %vm407_vm5, %v1555_v3  ;;  %v2550_v56 = vrot.slane %v5901_v10, 2  ;;  %v2549_v6 = vsel %vm252_vm1, %v2548_v51, %v2547_v50 }
 0x2db   : > { %v1324_v12 = vrot.slane %v1296_v58, %v5989_v45  ;;  %v1326_v13 = vcombine.high %v1310_v59, %v1310_v59  ;;  %v1327_v14 = vcombine.high %v1317_v60, %v1317_v60  ;;  %1338 = vst.msk [vmem:[%s6001_s14 + $0x12] sm:$0x1] %vm768_vm7, %v1317_v60  ;;  %1339 = vst.msk [vmem:[%s6001_s14 + $0x22] sm:$0x1] %vm768_vm7, %v1325_v61  ;;  %5255 = vmatmul.mubr.msk.f32.vlgmr.msra.gmra.mrb[14].mxu1 %vm403_vm6, %v5935_v22 }
 0x2dc   : > { %1341 = vst.msk [vmem:[%s6001_s14 + $0x42] sm:$0x1] %vm768_vm7, %v1310_v59  ;;  %v1360_v17 = vrot.slane %v1346_v63, %v5989_v45  ;;  %v1361_v18 = vcombine.high %v1353_v2, %v1353_v2  ;;  %v1369_v19 = vrot.slane %v1353_v2, %v5989_v45  ;;  %5250 = vmatmul.mubr.msk.f32.vlgmr.msra.gmra.mrb[14].mxu0 %vm403_vm6, %v5930_v21  ;;  %v3117_v50 = vrot.slane %v5896_v8, 4 }
 0x2dd   : > { %5257 = vmatprep.subr.mxu0 %v5701_v1  ;;  %v1328_v20 = vcombine.high %v1324_v12, %v1324_v12  ;;  %1340 = vst.msk [vmem:[%s6001_s14 + $0x32] sm:$0x1] %vm768_vm7, %v1327_v14  ;;  %1342 = vst.msk [vmem:[%s6001_s14 + $0x52] sm:$0x1] %vm768_vm7, %v1324_v12  ;;  %5262 = vmatprep.subr.mxu1 %v5701_v1 }
 0x2de   : > { %1343 = vst.msk [vmem:[%s6001_s14 + $0x62] sm:$0x1] %vm768_vm7, %v1326_v13  ;;  %5258 = vmatpush3.msk.msra.mxu0 %vm407_vm5, %v1555_v3  ;;  %v1362_v23 = vcombine.high %v1360_v17, %v1360_v17  ;;  %v1376_v24 = vrot.slane %v1360_v17, %v5989_v45  ;;  %v1383_v25 = vrot.slane %v1361_v18, %v5989_v45  ;;  %1403 = vst.msk [vmem:[%s6001_s14 + $0x3] sm:$0x1] %vm768_vm7, %v1369_v19 }
 0x2df   : > { %v1391_v26 = vcombine.high %v1369_v19, %v1369_v19  ;;  %5263 = vmatpush3.msk.msra.mxu1 %vm407_vm5, %v1485_v62  ;;  %1344 = vst.msk [vmem:[%s6001_s14 + $0x72] sm:$0x1] %vm768_vm7, %v1328_v20  ;;  %5259 = vmatprep.mubr.msk.f32.mxu0 %vm5700_vm0, %v5701_v1  ;;  %v2551_v19 = vsel %vm255_vm2, %v2550_v56, %v2549_v6  ;;  %v2552_v20 = vrot.slane %v5904_v11, 1 }
 0x2e0   : > { %5264 = vmatprep.mubr.msk.f32.mxu1 %vm5700_vm0, %v5701_v1  ;;  %v1390_v28 = vrot.slane %v1362_v23, %v5989_v45  ;;  %v1392_v31 = vcombine.high %v1376_v24, %v1376_v24  ;;  %v1393_v32 = vcombine.high %v1383_v25, %v1383_v25  ;;  %1404 = vst.msk [vmem:[%s6001_s14 + $0x13] sm:$0x1] %vm768_vm7, %v1383_v25  ;;  %1407 = vst.msk [vmem:[%s6001_s14 + $0x43] sm:$0x1] %vm768_vm7, %v1376_v24 }
 0x2e1   : > { %1405 = vst.msk [vmem:[%s6001_s14 + $0x23] sm:$0x1] %vm768_vm7, %v1391_v26  ;;  %5260 = vmatmul.mubr.msk.f32.vlgmr.msra.gmra.mrb[16].mxu0 %vm403_vm6, %v5951_v29  ;;  %5265 = vmatmul.mubr.msk.f32.vlgmr.msra.gmra.mrb[16].mxu1 %vm403_vm6, %v5956_v30 }
 0x2e2   : > { %5455 = vmatprep.subr.bf16.mxu0 %v5699_v0  ;;  %5458 = vmatprep.subr.bf16.mxu1 %v5699_v0  ;;  %v1394_v33 = vcombine.high %v1390_v28, %v1390_v28  ;;  %1406 = vst.msk [vmem:[%s6001_s14 + $0x33] sm:$0x1] %vm768_vm7, %v1393_v32  ;;  %1408 = vst.msk [vmem:[%s6001_s14 + $0x53] sm:$0x1] %vm768_vm7, %v1390_v28  ;;  %v2553_v32 = vsel %vm258_vm3, %v2552_v20, %v2551_v19 }
 0x2e3   : > { %1409 = vst.msk [vmem:[%s6001_s14 + $0x63] sm:$0x1] %vm768_vm7, %v1392_v31  ;;  %5457 = vmatpush3.bf16.msra.mxu0 %v5887_v5  ;;  %5460 = vmatpush3.bf16.msra.mxu1 %v5898_v9 }
 0x2e4   : > { %5271 = vmatprep.mubr.msk.f32.mxu0 %vm5700_vm0, %v5701_v1  ;;  %5278 = vmatprep.mubr.msk.f32.mxu1 %vm5700_vm0, %v5701_v1  ;;  %1410 = vst.msk [vmem:[%s6001_s14 + $0x73] sm:$0x1] %vm768_vm7, %v1394_v33 }
 0x2e5   : > { %5281 = vmatprep.subr.mxu0 %v5701_v1  ;;  %5286 = vmatprep.subr.mxu1 %v5701_v1 }
 0x2e6   : > { %5272 = vmatmul.mubr.msk.f32.vlgmr.msra.gmra.mrb[18].mxu0 %vm260_vm4, %v1984_v34  ;;  %5279 = vmatmul.mubr.msk.f32.vlgmr.msra.gmra.mrb[18].mxu1 %vm260_vm4, %v1984_v34 }
 0x2e7   : > { %5283 = vmatprep.mubr.msk.f32.mxu0 %vm5700_vm0, %v5701_v1  ;;  %5288 = vmatprep.mubr.msk.f32.mxu1 %vm5700_vm0, %v5701_v1 }
 0x3ae   : > { %v1701_v35 = vpop.f32.mrb[14].mxu1 }
 0x3af   : > { %v1628_v36 = vpop.f32.mrb[14].mxu0  ;;  %v5256_v37 = vpop.f32.mrb[15].mxu1 }
 0x3b0   : > { %v1702_v38 = vadd.f32 %v1701_v35, %v1628_v36  ;;  %v5251_v40 = vpop.f32.mrb[15].mxu0 }
 0x3b2   : > { %v1705_v41 = vadd.f32 %v1702_v38, %v5987_v39 }
 0x3b4   : > { %v1772_v42 = vpop.f32.mrb[16].mxu0  ;;  %v1842_v43 = vpop.f32.mrb[16].mxu1  ;;  %v1848_v44 = vcombine.high %v1705_v41, %v1705_v41  ;;  %v1855_v46 = vrot.slane %v1705_v41, %v5989_v45 }
 0x3b5   : > { %v1843_v47 = vadd.f32 %v1842_v43, %v1772_v42  ;;  %v5261_v48 = vpop.f32.mrb[17].mxu0  ;;  %v5266_v49 = vpop.f32.mrb[17].mxu1 }
 0x3b6   : > { %v1862_v52 = vrot.slane %v1848_v44, %v5989_v45  ;;  %v1863_v53 = vcombine.high %v1855_v46, %v1855_v46  ;;  %v1871_v54 = vrot.slane %v1855_v46, %v5989_v45  ;;  %v3116_v49 = vrot.slane %v5893_v7, 5 }
 0x3b7   : > { %v1846_v55 = vadd.f32 %v1843_v47, %v5987_v39 }
 0x3b8   : > { %v1864_v57 = vcombine.high %v1862_v52, %v1862_v52  ;;  %v1878_v58 = vrot.slane %v1862_v52, %v5989_v45  ;;  %v1885_v59 = vrot.slane %v1863_v53, %v5989_v45  ;;  %v1893_v60 = vcombine.high %v1871_v54, %v1871_v54  ;;  %1905 = vst.msk [vmem:[%s6001_s14 + $0x4] sm:$0x1] %vm768_vm7, %v1871_v54 }
 0x3b9   : > { %v2053_v61 = vpop.f32.mrb[18].mxu0  ;;  %v2123_v62 = vpop.f32.mrb[18].mxu1  ;;  %v1914_v63 = vcombine.high %v1846_v55, %v1846_v55  ;;  %v1921_v2 = vrot.slane %v1846_v55, %v5989_v45 }
 0x3ba   : > { %v5273_v3 = vpop.f32.mrb[19].mxu0  ;;  %v5280_v4 = vpop.f32.mrb[19].mxu1  ;;  %5282 = vmatpush3.msk.msra.mxu0 %vm407_vm5, %v2123_v62  ;;  %5287 = vmatpush3.msk.msra.mxu1 %vm407_vm5, %v2053_v61  ;;  %v1892_v12 = vrot.slane %v1864_v57, %v5989_v45  ;;  %v1894_v13 = vcombine.high %v1878_v58, %v1878_v58  ;;  %v1895_v14 = vcombine.high %v1885_v59, %v1885_v59 }
 0x3bb   : > { %1906 = vst.msk [vmem:[%s6001_s14 + $0x14] sm:$0x1] %vm768_vm7, %v1885_v59  ;;  %1907 = vst.msk [vmem:[%s6001_s14 + $0x24] sm:$0x1] %vm768_vm7, %v1893_v60  ;;  %5284 = vmatmul.mubr.msk.f32.vlgmr.msra.gmra.mrb[20].mxu0 %vm403_vm6, %v5930_v21  ;;  %5289 = vmatmul.mubr.msk.f32.vlgmr.msra.gmra.mrb[20].mxu1 %vm403_vm6, %v5935_v22  ;;  %v1928_v15 = vrot.slane %v1914_v63, %v5989_v45  ;;  %v1929_v16 = vcombine.high %v1921_v2, %v1921_v2 }
 0x3bc   : > { %1909 = vst.msk [vmem:[%s6001_s14 + $0x44] sm:$0x1] %vm768_vm7, %v1878_v58  ;;  %v1937_v17 = vrot.slane %v1921_v2, %v5989_v45  ;;  %5291 = vmatprep.subr.mxu0 %v5701_v1  ;;  %5296 = vmatprep.subr.mxu1 %v5701_v1  ;;  %v1896_v18 = vcombine.high %v1892_v12, %v1892_v12  ;;  %1908 = vst.msk [vmem:[%s6001_s14 + $0x34] sm:$0x1] %vm768_vm7, %v1895_v14 }
 0x3bd   : > { %1910 = vst.msk [vmem:[%s6001_s14 + $0x54] sm:$0x1] %vm768_vm7, %v1892_v12  ;;  %1911 = vst.msk [vmem:[%s6001_s14 + $0x64] sm:$0x1] %vm768_vm7, %v1894_v13  ;;  %5292 = vmatpush3.msk.msra.mxu0 %vm407_vm5, %v2123_v62  ;;  %5297 = vmatpush3.msk.msra.mxu1 %vm407_vm5, %v2053_v61  ;;  %v1930_v23 = vcombine.high %v1928_v15, %v1928_v15  ;;  %v1944_v24 = vrot.slane %v1928_v15, %v5989_v45  ;;  %v3119_v13 = vrot.slane %v5901_v10, 3 }
 0x3be   : > { %v1951_v25 = vrot.slane %v1929_v16, %v5989_v45  ;;  %v1959_v26 = vcombine.high %v1937_v17, %v1937_v17  ;;  %1971 = vst.msk [vmem:[%s6001_s14 + $0x5] sm:$0x1] %vm768_vm7, %v1937_v17  ;;  %5293 = vmatprep.mubr.msk.f32.mxu0 %vm5700_vm0, %v5701_v1  ;;  %1912 = vst.msk [vmem:[%s6001_s14 + $0x74] sm:$0x1] %vm768_vm7, %v1896_v18  ;;  %5298 = vmatprep.mubr.msk.f32.mxu1 %vm5700_vm0, %v5701_v1  ;;  %v3121_v18 = vrot.slane %v5904_v11, 2 }
 0x3bf   : > { %5294 = vmatmul.mubr.msk.f32.vlgmr.msra.gmra.mrb[22].mxu0 %vm403_vm6, %v5951_v29  ;;  %v1958_v27 = vrot.slane %v1930_v23, %v5989_v45  ;;  %v1960_v28 = vcombine.high %v1944_v24, %v1944_v24  ;;  %1975 = vst.msk [vmem:[%s6001_s14 + $0x45] sm:$0x1] %vm768_vm7, %v1944_v24  ;;  %5299 = vmatmul.mubr.msk.f32.vlgmr.msra.gmra.mrb[22].mxu1 %vm403_vm6, %v5956_v30 }
 0x3c0   : > { %v1961_v31 = vcombine.high %v1951_v25, %v1951_v25  ;;  %1972 = vst.msk [vmem:[%s6001_s14 + $0x15] sm:$0x1] %vm768_vm7, %v1951_v25  ;;  %1973 = vst.msk [vmem:[%s6001_s14 + $0x25] sm:$0x1] %vm768_vm7, %v1959_v26  ;;  %5461 = vmatprep.subr.bf16.mxu0 %v5699_v0  ;;  %5464 = vmatprep.subr.bf16.mxu1 %v5699_v0  ;;  %v3118_v2 = vsel %vm252_vm1, %v3117_v50, %v3116_v49  ;;  %v3686_v49 = vrot.slane %v5896_v8, 5 }
 0x3c1   : > { %5463 = vmatpush3.bf16.msra.mxu0 %v5887_v5  ;;  %v1962_v33 = vcombine.high %v1958_v27, %v1958_v27  ;;  %1976 = vst.msk [vmem:[%s6001_s14 + $0x55] sm:$0x1] %vm768_vm7, %v1958_v27  ;;  %1977 = vst.msk [vmem:[%s6001_s14 + $0x65] sm:$0x1] %vm768_vm7, %v1960_v28  ;;  %5466 = vmatpush3.bf16.msra.mxu1 %v5898_v9  ;;  %v3120_v25 = vsel %vm255_vm2, %v3119_v13, %v3118_v2 }
 0x3c2   : > { %1974 = vst.msk [vmem:[%s6001_s14 + $0x35] sm:$0x1] %vm768_vm7, %v1961_v31  ;;  %5305 = vmatprep.mubr.msk.f32.mxu0 %vm5700_vm0, %v5701_v1  ;;  %5312 = vmatprep.mubr.msk.f32.mxu1 %vm5700_vm0, %v5701_v1 }
 0x3c3   : > { %5315 = vmatprep.subr.mxu0 %v5701_v1  ;;  %1978 = vst.msk [vmem:[%s6001_s14 + $0x75] sm:$0x1] %vm768_vm7, %v1962_v33  ;;  %5320 = vmatprep.subr.mxu1 %v5701_v1 }
 0x3c4   : > { %5306 = vmatmul.mubr.msk.f32.vlgmr.msra.gmra.mrb[24].mxu0 %vm260_vm4, %v2553_v32  ;;  %5313 = vmatmul.mubr.msk.f32.vlgmr.msra.gmra.mrb[24].mxu1 %vm260_vm4, %v2553_v32  ;;  %v3122_v32 = vsel %vm258_vm3, %v3121_v18, %v3120_v25 }
 0x3c5   : > { %5317 = vmatprep.mubr.msk.f32.mxu0 %vm5700_vm0, %v5701_v1  ;;  %5322 = vmatprep.mubr.msk.f32.mxu1 %vm5700_vm0, %v5701_v1 }
 0x48e   : > { %v2196_v34 = vpop.f32.mrb[20].mxu0  ;;  %v2269_v35 = vpop.f32.mrb[20].mxu1 }
 0x48f   : > { %v2270_v36 = vadd.f32 %v2269_v35, %v2196_v34  ;;  %v5285_v37 = vpop.f32.mrb[21].mxu0  ;;  %v5290_v38 = vpop.f32.mrb[21].mxu1 }
 0x491   : > { %v2273_v40 = vadd.f32 %v2270_v36, %v5987_v39 }
 0x492   : > { %v2340_v41 = vpop.f32.mrb[22].mxu0  ;;  %v2410_v44 = vpop.f32.mrb[22].mxu1 }
 0x493   : > { %v2416_v42 = vcombine.high %v2273_v40, %v2273_v40  ;;  %v2423_v43 = vrot.slane %v2273_v40, %v5989_v45  ;;  %v5295_v46 = vpop.f32.mrb[23].mxu0  ;;  %v2411_v47 = vadd.f32 %v2410_v44, %v2340_v41  ;;  %v5300_v48 = vpop.f32.mrb[23].mxu1 }
 0x494   : > { %v3685_v48 = vrot.slane %v5893_v7, 6 }
 0x495   : > { %v2430_v51 = vrot.slane %v2416_v42, %v5989_v45  ;;  %v2431_v52 = vcombine.high %v2423_v43, %v2423_v43  ;;  %v2439_v53 = vrot.slane %v2423_v43, %v5989_v45  ;;  %v2414_v54 = vadd.f32 %v2411_v47, %v5987_v39 }
 0x497   : > { %v2432_v55 = vcombine.high %v2430_v51, %v2430_v51  ;;  %v2446_v56 = vrot.slane %v2430_v51, %v5989_v45  ;;  %v2453_v57 = vrot.slane %v2431_v52, %v5989_v45  ;;  %v2461_v58 = vcombine.high %v2439_v53, %v2439_v53  ;;  %2473 = vst.msk [vmem:[%s6001_s14 + $0x6] sm:$0x1] %vm768_vm7, %v2439_v53  ;;  %v2622_v59 = vpop.f32.mrb[24].mxu0  ;;  %v2692_v62 = vpop.f32.mrb[24].mxu1 }
 0x498   : > { %v2482_v60 = vcombine.high %v2414_v54, %v2414_v54  ;;  %v2489_v61 = vrot.slane %v2414_v54, %v5989_v45  ;;  %v5307_v63 = vpop.f32.mrb[25].mxu0  ;;  %5321 = vmatpush3.msk.msra.mxu1 %vm407_vm5, %v2622_v59  ;;  %v5314_v12 = vpop.f32.mrb[25].mxu1  ;;  %5316 = vmatpush3.msk.msra.mxu0 %vm407_vm5, %v2692_v62  ;;  %v3688_v54 = vrot.slane %v5901_v10, 4  ;;  %v3687_v10 = vsel %vm252_vm1, %v3686_v49, %v3685_v48 }
 0x499   : > { %v2460_v3 = vrot.slane %v2432_v55, %v5989_v45  ;;  %v2462_v4 = vcombine.high %v2446_v56, %v2446_v56  ;;  %v2463_v6 = vcombine.high %v2453_v57, %v2453_v57  ;;  %2474 = vst.msk [vmem:[%s6001_s14 + $0x16] sm:$0x1] %vm768_vm7, %v2453_v57  ;;  %2475 = vst.msk [vmem:[%s6001_s14 + $0x26] sm:$0x1] %vm768_vm7, %v2461_v58  ;;  %5323 = vmatmul.mubr.msk.f32.vlgmr.msra.gmra.mrb[26].mxu1 %vm403_vm6, %v5935_v22 }
 0x49a   : > { %2477 = vst.msk [vmem:[%s6001_s14 + $0x46] sm:$0x1] %vm768_vm7, %v2446_v56  ;;  %v2496_v14 = vrot.slane %v2482_v60, %v5989_v45  ;;  %v2497_v15 = vcombine.high %v2489_v61, %v2489_v61  ;;  %v2505_v16 = vrot.slane %v2489_v61, %v5989_v45  ;;  %5318 = vmatmul.mubr.msk.f32.vlgmr.msra.gmra.mrb[26].mxu0 %vm403_vm6, %v5930_v21 }
 0x49b   : > { %5325 = vmatprep.subr.mxu0 %v5701_v1  ;;  %v2464_v17 = vcombine.high %v2460_v3, %v2460_v3  ;;  %2476 = vst.msk [vmem:[%s6001_s14 + $0x36] sm:$0x1] %vm768_vm7, %v2463_v6  ;;  %2478 = vst.msk [vmem:[%s6001_s14 + $0x56] sm:$0x1] %vm768_vm7, %v2460_v3  ;;  %5330 = vmatprep.subr.mxu1 %v5701_v1 }
 0x49c   : > { %2479 = vst.msk [vmem:[%s6001_s14 + $0x66] sm:$0x1] %vm768_vm7, %v2462_v4  ;;  %5326 = vmatpush3.msk.msra.mxu0 %vm407_vm5, %v2692_v62  ;;  %v2498_v19 = vcombine.high %v2496_v14, %v2496_v14  ;;  %v2512_v20 = vrot.slane %v2496_v14, %v5989_v45  ;;  %v2519_v23 = vrot.slane %v2497_v15, %v5989_v45  ;;  %2539 = vst.msk [vmem:[%s6001_s14 + $0x7] sm:$0x1] %vm768_vm7, %v2505_v16 }
 0x49d   : > { %v2527_v24 = vcombine.high %v2505_v16, %v2505_v16  ;;  %5331 = vmatpush3.msk.msra.mxu1 %vm407_vm5, %v2622_v59  ;;  %2480 = vst.msk [vmem:[%s6001_s14 + $0x76] sm:$0x1] %vm768_vm7, %v2464_v17  ;;  %5327 = vmatprep.mubr.msk.f32.mxu0 %vm5700_vm0, %v5701_v1 }
 0x49e   : > { %5332 = vmatprep.mubr.msk.f32.mxu1 %vm5700_vm0, %v5701_v1  ;;  %v2526_v26 = vrot.slane %v2498_v19, %v5989_v45  ;;  %v2528_v27 = vcombine.high %v2512_v20, %v2512_v20  ;;  %v2529_v28 = vcombine.high %v2519_v23, %v2519_v23  ;;  %2540 = vst.msk [vmem:[%s6001_s14 + $0x17] sm:$0x1] %vm768_vm7, %v2519_v23  ;;  %2543 = vst.msk [vmem:[%s6001_s14 + $0x47] sm:$0x1] %vm768_vm7, %v2512_v20 }
 0x49f   : > { %2541 = vst.msk [vmem:[%s6001_s14 + $0x27] sm:$0x1] %vm768_vm7, %v2527_v24  ;;  %5328 = vmatmul.mubr.msk.f32.vlgmr.msra.gmra.mrb[28].mxu0 %vm403_vm6, %v5951_v29  ;;  %5333 = vmatmul.mubr.msk.f32.vlgmr.msra.gmra.mrb[28].mxu1 %vm403_vm6, %v5956_v30 }
 0x4a0   : > { %5467 = vmatprep.subr.bf16.mxu0 %v5699_v0  ;;  %5470 = vmatprep.subr.bf16.mxu1 %v5699_v0  ;;  %v2530_v31 = vcombine.high %v2526_v26, %v2526_v26  ;;  %2542 = vst.msk [vmem:[%s6001_s14 + $0x37] sm:$0x1] %vm768_vm7, %v2529_v28  ;;  %2544 = vst.msk [vmem:[%s6001_s14 + $0x57] sm:$0x1] %vm768_vm7, %v2526_v26 }
 0x4a1   : > { %2545 = vst.msk [vmem:[%s6001_s14 + $0x67] sm:$0x1] %vm768_vm7, %v2528_v27  ;;  %5469 = vmatpush3.bf16.msra.mxu0 %v5887_v5  ;;  %5472 = vmatpush3.bf16.msra.mxu1 %v5898_v9 }
 0x4a2   : > { %5339 = vmatprep.mubr.msk.f32.mxu0 %vm5700_vm0, %v5701_v1  ;;  %5346 = vmatprep.mubr.msk.f32.mxu1 %vm5700_vm0, %v5701_v1  ;;  %2546 = vst.msk [vmem:[%s6001_s14 + $0x77] sm:$0x1] %vm768_vm7, %v2530_v31 }
 0x4a3   : > { %5349 = vmatprep.subr.mxu0 %v5701_v1  ;;  %5354 = vmatprep.subr.mxu1 %v5701_v1 }
 0x4a4   : > { %5340 = vmatmul.mubr.msk.f32.vlgmr.msra.gmra.mrb[30].mxu0 %vm260_vm4, %v3122_v32  ;;  %5347 = vmatmul.mubr.msk.f32.vlgmr.msra.gmra.mrb[30].mxu1 %vm260_vm4, %v3122_v32 }
 0x4a5   : > { %5351 = vmatprep.mubr.msk.f32.mxu0 %vm5700_vm0, %v5701_v1  ;;  %5356 = vmatprep.mubr.msk.f32.mxu1 %vm5700_vm0, %v5701_v1 }
 0x56c   : > { %v2838_v33 = vpop.f32.mrb[26].mxu1 }
 0x56d   : > { %v2765_v34 = vpop.f32.mrb[26].mxu0  ;;  %v5324_v35 = vpop.f32.mrb[27].mxu1 }
 0x56e   : > { %v2839_v36 = vadd.f32 %v2838_v33, %v2765_v34  ;;  %v5319_v37 = vpop.f32.mrb[27].mxu0 }
 0x56f   : > { %v5585_v37 = vld [vmem:[%s5866_s9] sm:$0xff] }
 0x570   : > { %v2842_v38 = vadd.f32 %v2839_v36, %v5987_v39 }
 0x572   : > { %v2909_v40 = vpop.f32.mrb[28].mxu0  ;;  %v2979_v41 = vpop.f32.mrb[28].mxu1  ;;  %v2985_v42 = vcombine.high %v2842_v38, %v2842_v38  ;;  %v2992_v43 = vrot.slane %v2842_v38, %v5989_v45  ;;  %v4254_v38 = vrot.slane %v5585_v37, 7 }
 0x573   : > { %v2980_v44 = vadd.f32 %v2979_v41, %v2909_v40  ;;  %v5329_v46 = vpop.f32.mrb[29].mxu0  ;;  %v5334_v47 = vpop.f32.mrb[29].mxu1  ;;  %v5586_v40 = vld [vmem:[%s5866_s9 + $0x8] sm:$0xff] }
 0x574   : > { %v2999_v50 = vrot.slane %v2985_v42, %v5989_v45  ;;  %v3000_v51 = vcombine.high %v2992_v43, %v2992_v43  ;;  %v3008_v52 = vrot.slane %v2992_v43, %v5989_v45  ;;  %v4255_v41 = vrot.slane %v5586_v40, 6 }
 0x575   : > { %v2983_v53 = vadd.f32 %v2980_v44, %v5987_v39 }
 0x576   : > { %v3001_v55 = vcombine.high %v2999_v50, %v2999_v50  ;;  %v3015_v56 = vrot.slane %v2999_v50, %v5989_v45  ;;  %v3022_v57 = vrot.slane %v3000_v51, %v5989_v45  ;;  %v3030_v58 = vcombine.high %v3008_v52, %v3008_v52  ;;  %3042 = vst.msk [vmem:[%s6001_s14 + $0x8] sm:$0x1] %vm768_vm7, %v3008_v52 }
 0x577   : > { %v3191_v7 = vpop.f32.mrb[30].mxu0  ;;  %v3261_v8 = vpop.f32.mrb[30].mxu1  ;;  %v3051_v59 = vcombine.high %v2983_v53, %v2983_v53  ;;  %v3058_v60 = vrot.slane %v2983_v53, %v5989_v45 }
 0x578   : > { %v5341_v61 = vpop.f32.mrb[31].mxu0  ;;  %v5348_v62 = vpop.f32.mrb[31].mxu1  ;;  %5350 = vmatpush3.msk.msra.mxu0 %vm407_vm5, %v3261_v8  ;;  %5355 = vmatpush3.msk.msra.mxu1 %vm407_vm5, %v3191_v7  ;;  %v3029_v63 = vrot.slane %v3001_v55, %v5989_v45  ;;  %v3031_v2 = vcombine.high %v3015_v56, %v3015_v56  ;;  %v3032_v3 = vcombine.high %v3022_v57, %v3022_v57 }
 0x579   : > { %3043 = vst.msk [vmem:[%s6001_s14 + $0x18] sm:$0x1] %vm768_vm7, %v3022_v57  ;;  %3044 = vst.msk [vmem:[%s6001_s14 + $0x28] sm:$0x1] %vm768_vm7, %v3030_v58  ;;  %5352 = vmatmul.mubr.msk.f32.vlgmr.msra.gmra.mrb[32].mxu0 %vm403_vm6, %v5930_v21  ;;  %5357 = vmatmul.mubr.msk.f32.vlgmr.msra.gmra.mrb[32].mxu1 %vm403_vm6, %v5935_v22  ;;  %v3065_v4 = vrot.slane %v3051_v59, %v5989_v45  ;;  %v3066_v6 = vcombine.high %v3058_v60, %v3058_v60  ;;  %v3690_v22 = vrot.slane %v5904_v11, 3  ;;  %v6454_v59 = vld [vmem:[%s6696_s1] sm:$0xff] }
 0x57a   : > { %3046 = vst.msk [vmem:[%s6001_s14 + $0x48] sm:$0x1] %vm768_vm7, %v3015_v56  ;;  %v3074_v12 = vrot.slane %v3058_v60, %v5989_v45  ;;  %5359 = vmatprep.subr.mxu0 %v5701_v1  ;;  %5364 = vmatprep.subr.mxu1 %v5701_v1  ;;  %v3033_v13 = vcombine.high %v3029_v63, %v3029_v63  ;;  %3045 = vst.msk [vmem:[%s6001_s14 + $0x38] sm:$0x1] %vm768_vm7, %v3032_v3  ;;  %v5588_v60 = vld [vmem:[%s5866_s9 + $0x10] sm:$0xff] }
 0x57b   : > { %3047 = vst.msk [vmem:[%s6001_s14 + $0x58] sm:$0x1] %vm768_vm7, %v3029_v63  ;;  %3048 = vst.msk [vmem:[%s6001_s14 + $0x68] sm:$0x1] %vm768_vm7, %v3031_v2  ;;  %5360 = vmatpush3.msk.msra.mxu0 %vm407_vm5, %v3261_v8  ;;  %5365 = vmatpush3.msk.msra.mxu1 %vm407_vm5, %v3191_v7  ;;  %v3689_v21 = vsel %vm255_vm2, %v3688_v54, %v3687_v10  ;;  %v3067_v14 = vcombine.high %v3065_v4, %v3065_v4  ;;  %v4257_v61 = vrot.slane %v5588_v60, 5  ;;  %v6464_v2 = vld [vmem:[%s6696_s1 + $0x8] sm:$0xff] }
 0x57c   : > { %v3081_v15 = vrot.slane %v3065_v4, %v5989_v45  ;;  %v3088_v16 = vrot.slane %v3066_v6, %v5989_v45  ;;  %v3096_v17 = vcombine.high %v3074_v12, %v3074_v12  ;;  %3108 = vst.msk [vmem:[%s6001_s14 + $0x9] sm:$0x1] %vm768_vm7, %v3074_v12  ;;  %5361 = vmatprep.mubr.msk.f32.mxu0 %vm5700_vm0, %v5701_v1  ;;  %3049 = vst.msk [vmem:[%s6001_s14 + $0x78] sm:$0x1] %vm768_vm7, %v3033_v13  ;;  %v5590_v4 = vld [vmem:[%s5866_s9 + $0x18] sm:$0xff] }
 0x57d   : > { %5366 = vmatprep.mubr.msk.f32.mxu1 %vm5700_vm0, %v5701_v1  ;;  %5362 = vmatmul.mubr.msk.f32.vlgmr.msra.gmra.mrb[34].mxu0 %vm403_vm6, %v5951_v29  ;;  %v3095_v11 = vrot.slane %v3067_v14, %v5989_v45  ;;  %v3691_v29 = vsel %vm258_vm3, %v3690_v22, %v3689_v21  ;;  %v4256_v56 = vsel %vm252_vm1, %v4255_v41, %v4254_v38  ;;  %v4259_v6 = vrot.slane %v5590_v4, 4 }
 0x57e   : > { %v3097_v18 = vcombine.high %v3081_v15, %v3081_v15  ;;  %v3098_v19 = vcombine.high %v3088_v16, %v3088_v16  ;;  %3109 = vst.msk [vmem:[%s6001_s14 + $0x19] sm:$0x1] %vm768_vm7, %v3088_v16  ;;  %3110 = vst.msk [vmem:[%s6001_s14 + $0x29] sm:$0x1] %vm768_vm7, %v3096_v17  ;;  %5367 = vmatmul.mubr.msk.f32.vlgmr.msra.gmra.mrb[34].mxu1 %vm403_vm6, %v5956_v30  ;;  %5473 = vmatprep.subr.bf16.mxu0 %v5699_v0 }
 0x57f   : > { %3112 = vst.msk [vmem:[%s6001_s14 + $0x49] sm:$0x1] %vm768_vm7, %v3081_v15  ;;  %5476 = vmatprep.subr.bf16.mxu1 %v5699_v0  ;;  %5475 = vmatpush3.bf16.msra.mxu0 %v5887_v5  ;;  %v3099_v20 = vcombine.high %v3095_v11, %v3095_v11  ;;  %3113 = vst.msk [vmem:[%s6001_s14 + $0x59] sm:$0x1] %vm768_vm7, %v3095_v11  ;;  %v4258_v14 = vsel %vm255_vm2, %v4257_v61, %v4256_v56  ;;  %v6500_v11 = vld [vmem:[%s6696_s1 + $0x18] sm:$0xff] }
 0x580   : > { %3111 = vst.msk [vmem:[%s6001_s14 + $0x39] sm:$0x1] %vm768_vm7, %v3098_v19  ;;  %3114 = vst.msk [vmem:[%s6001_s14 + $0x69] sm:$0x1] %vm768_vm7, %v3097_v18  ;;  %5478 = vmatpush3.bf16.msra.mxu1 %v5898_v9  ;;  %5373 = vmatprep.mubr.msk.f32.mxu0 %vm5700_vm0, %v5701_v1  ;;  %v6507_v18 = vld [vmem:[%s6696_s1 + $0x10] sm:$0xff] }
 0x581   : > { %5380 = vmatprep.mubr.msk.f32.mxu1 %vm5700_vm0, %v5701_v1  ;;  %5383 = vmatprep.subr.mxu0 %v5701_v1  ;;  %3115 = vst.msk [vmem:[%s6001_s14 + $0x79] sm:$0x1] %vm768_vm7, %v3099_v20 }
 0x582   : > { %5374 = vmatmul.mubr.msk.f32.vlgmr.msra.gmra.mrb[36].mxu0 %vm260_vm4, %v3691_v29  ;;  %5388 = vmatprep.subr.mxu1 %v5701_v1 }
 0x583   : > { %5381 = vmatmul.mubr.msk.f32.vlgmr.msra.gmra.mrb[36].mxu1 %vm260_vm4, %v3691_v29  ;;  %5385 = vmatprep.mubr.msk.f32.mxu0 %vm5700_vm0, %v5701_v1  ;;  %v4260_v29 = vsel %vm258_vm3, %v4259_v6, %v4258_v14 }
 0x584   : > { %5390 = vmatprep.mubr.msk.f32.mxu1 %vm5700_vm0, %v5701_v1 }
 0x64c   : > { %v3334_v30 = vpop.f32.mrb[32].mxu0  ;;  %v3407_v23 = vpop.f32.mrb[32].mxu1 }
 0x64d   : > { %v3408_v24 = vadd.f32 %v3407_v23, %v3334_v30  ;;  %v5353_v25 = vpop.f32.mrb[33].mxu0  ;;  %v5358_v26 = vpop.f32.mrb[33].mxu1 }
 0x64f   : > { %v3411_v27 = vadd.f32 %v3408_v24, %v5987_v39 }
 0x650   : > { %v3478_v28 = vpop.f32.mrb[34].mxu0 }
 0x651   : > { %v3554_v31 = vcombine.high %v3411_v27, %v3411_v27  ;;  %v3561_v32 = vrot.slane %v3411_v27, %v5989_v45  ;;  %v3548_v33 = vpop.f32.mrb[34].mxu1  ;;  %v5363_v34 = vpop.f32.mrb[35].mxu0 }
 0x652   : > { %v3549_v35 = vadd.f32 %v3548_v33, %v3478_v28  ;;  %v5368_v36 = vpop.f32.mrb[35].mxu1 }
 0x653   : > { %v3568_v42 = vrot.slane %v3554_v31, %v5989_v45  ;;  %v3569_v43 = vcombine.high %v3561_v32, %v3561_v32  ;;  %v3577_v44 = vrot.slane %v3561_v32, %v5989_v45 }
 0x654   : > { %v3552_v46 = vadd.f32 %v3549_v35, %v5987_v39 }
 0x655   : > { %v3570_v47 = vcombine.high %v3568_v42, %v3568_v42  ;;  %v3584_v48 = vrot.slane %v3568_v42, %v5989_v45  ;;  %v3591_v49 = vrot.slane %v3569_v43, %v5989_v45  ;;  %v3599_v50 = vcombine.high %v3577_v44, %v3577_v44  ;;  %3611 = vst.msk [vmem:[%s6001_s14 + $0xa] sm:$0x1] %vm768_vm7, %v3577_v44  ;;  %v3760_v51 = vpop.f32.mrb[36].mxu0 }
 0x656   : > { %v3620_v52 = vcombine.high %v3552_v46, %v3552_v46  ;;  %v3627_v53 = vrot.slane %v3552_v46, %v5989_v45  ;;  %v3830_v54 = vpop.f32.mrb[36].mxu1  ;;  %v5375_v55 = vpop.f32.mrb[37].mxu0  ;;  %5389 = vmatpush3.msk.msra.mxu1 %vm407_vm5, %v3760_v51 }
 0x657   : > { %v3598_v57 = vrot.slane %v3570_v47, %v5989_v45  ;;  %v3600_v58 = vcombine.high %v3584_v48, %v3584_v48  ;;  %v3601_v7 = vcombine.high %v3591_v49, %v3591_v49  ;;  %3612 = vst.msk [vmem:[%s6001_s14 + $0x1a] sm:$0x1] %vm768_vm7, %v3591_v49  ;;  %3613 = vst.msk [vmem:[%s6001_s14 + $0x2a] sm:$0x1] %vm768_vm7, %v3599_v50  ;;  %v5382_v8 = vpop.f32.mrb[37].mxu1  ;;  %5384 = vmatpush3.msk.msra.mxu0 %vm407_vm5, %v3830_v54 }
 0x658   : > { %3615 = vst.msk [vmem:[%s6001_s14 + $0x4a] sm:$0x1] %vm768_vm7, %v3584_v48  ;;  %5391 = vmatmul.mubr.msk.f32.vlgmr.msra.gmra.mrb[38].mxu1 %vm403_vm6, %v6454_v59  ;;  %v3634_v62 = vrot.slane %v3620_v52, %v5989_v45  ;;  %v3635_v10 = vcombine.high %v3627_v53, %v3627_v53  ;;  %v3643_v63 = vrot.slane %v3627_v53, %v5989_v45 }
 0x659   : > { %5386 = vmatmul.mubr.msk.f32.vlgmr.msra.gmra.mrb[38].mxu0 %vm403_vm6, %v6464_v2  ;;  %5393 = vmatprep.subr.mxu0 %v5701_v1  ;;  %v3602_v3 = vcombine.high %v3598_v57, %v3598_v57  ;;  %3614 = vst.msk [vmem:[%s6001_s14 + $0x3a] sm:$0x1] %vm768_vm7, %v3601_v7  ;;  %3616 = vst.msk [vmem:[%s6001_s14 + $0x5a] sm:$0x1] %vm768_vm7, %v3598_v57 }
 0x65a   : > { %3617 = vst.msk [vmem:[%s6001_s14 + $0x6a] sm:$0x1] %vm768_vm7, %v3600_v58  ;;  %5398 = vmatprep.subr.mxu1 %v5701_v1  ;;  %5394 = vmatpush3.msk.msra.mxu0 %vm407_vm5, %v3830_v54  ;;  %v3636_v12 = vcombine.high %v3634_v62, %v3634_v62  ;;  %v3650_v13 = vrot.slane %v3634_v62, %v5989_v45  ;;  %3677 = vst.msk [vmem:[%s6001_s14 + $0xb] sm:$0x1] %vm768_vm7, %v3643_v63 }
 0x65b   : > { %v3657_v21 = vrot.slane %v3635_v10, %v5989_v45  ;;  %v3665_v22 = vcombine.high %v3643_v63, %v3643_v63  ;;  %5399 = vmatpush3.msk.msra.mxu1 %vm407_vm5, %v3760_v51  ;;  %3618 = vst.msk [vmem:[%s6001_s14 + $0x7a] sm:$0x1] %vm768_vm7, %v3602_v3  ;;  %5395 = vmatprep.mubr.msk.f32.mxu0 %vm5700_vm0, %v5701_v1 }
 0x65c   : > { %5400 = vmatprep.mubr.msk.f32.mxu1 %vm5700_vm0, %v5701_v1  ;;  %v3664_v15 = vrot.slane %v3636_v12, %v5989_v45  ;;  %v3666_v16 = vcombine.high %v3650_v13, %v3650_v13  ;;  %3681 = vst.msk [vmem:[%s6001_s14 + $0x4b] sm:$0x1] %vm768_vm7, %v3650_v13  ;;  %5479 = vmatprep.subr.bf16.mxu0 %v5699_v0 }
 0x65d   : > { %v3667_v17 = vcombine.high %v3657_v21, %v3657_v21  ;;  %3678 = vst.msk [vmem:[%s6001_s14 + $0x1b] sm:$0x1] %vm768_vm7, %v3657_v21  ;;  %3679 = vst.msk [vmem:[%s6001_s14 + $0x2b] sm:$0x1] %vm768_vm7, %v3665_v22  ;;  %5396 = vmatmul.mubr.msk.f32.vlgmr.msra.gmra.mrb[40].mxu0 %vm403_vm6, %v6500_v11  ;;  %5401 = vmatmul.mubr.msk.f32.vlgmr.msra.gmra.mrb[40].mxu1 %vm403_vm6, %v6507_v18 }
 0x65e   : > { %5482 = vmatprep.subr.bf16.mxu1 %v5699_v0  ;;  %v3668_v19 = vcombine.high %v3664_v15, %v3664_v15  ;;  %3682 = vst.msk [vmem:[%s6001_s14 + $0x5b] sm:$0x1] %vm768_vm7, %v3664_v15  ;;  %3683 = vst.msk [vmem:[%s6001_s14 + $0x6b] sm:$0x1] %vm768_vm7, %v3666_v16  ;;  %5481 = vmatpush3.bf16.msra.mxu0 %v5887_v5 }
 0x65f   : > { %3680 = vst.msk [vmem:[%s6001_s14 + $0x3b] sm:$0x1] %vm768_vm7, %v3667_v17  ;;  %5484 = vmatpush3.bf16.msra.mxu1 %v5898_v9  ;;  %5407 = vmatprep.mubr.msk.f32.mxu0 %vm5700_vm0, %v5701_v1 }
 0x660   : > { %5414 = vmatprep.mubr.msk.f32.mxu1 %vm5700_vm0, %v5701_v1  ;;  %3684 = vst.msk [vmem:[%s6001_s14 + $0x7b] sm:$0x1] %vm768_vm7, %v3668_v19  ;;  %5417 = vmatprep.subr.mxu0 %v5701_v1 }
 0x661   : > { %5422 = vmatprep.subr.mxu1 %v5701_v1  ;;  %5408 = vmatmul.mubr.msk.f32.vlgmr.msra.gmra.mrb[42].mxu0 %vm260_vm4, %v4260_v29 }
 0x662   : > { %5415 = vmatmul.mubr.msk.f32.vlgmr.msra.gmra.mrb[42].mxu1 %vm260_vm4, %v4260_v29  ;;  %5419 = vmatprep.mubr.msk.f32.mxu0 %vm5700_vm0, %v5701_v1 }
 0x663   : > { %5424 = vmatprep.mubr.msk.f32.mxu1 %vm5700_vm0, %v5701_v1 }
 0x72b   : > { %v3976_v0 = vpop.f32.mrb[38].mxu1 }
 0x72c   : > { %v3903_v5 = vpop.f32.mrb[38].mxu0  ;;  %v5392_v9 = vpop.f32.mrb[39].mxu1 }
 0x72d   : > { %v3977_v20 = vadd.f32 %v3976_v0, %v3903_v5  ;;  %v5387_v30 = vpop.f32.mrb[39].mxu0 }
 0x72f   : > { %v3980_v23 = vadd.f32 %v3977_v20, %v5987_v39 }
 0x730   : > { %v4047_v24 = vpop.f32.mrb[40].mxu0  ;;  %v4117_v25 = vpop.f32.mrb[40].mxu1 }
 0x731   : > { %v4123_v26 = vcombine.high %v3980_v23, %v3980_v23  ;;  %v4130_v27 = vrot.slane %v3980_v23, %v5989_v45  ;;  %v4118_v28 = vadd.f32 %v4117_v25, %v4047_v24  ;;  %v5397_v31 = vpop.f32.mrb[41].mxu0  ;;  %v5402_v32 = vpop.f32.mrb[41].mxu1 }
 0x733   : > { %v4137_v33 = vrot.slane %v4123_v26, %v5989_v45  ;;  %v4138_v34 = vcombine.high %v4130_v27, %v4130_v27  ;;  %v4146_v35 = vrot.slane %v4130_v27, %v5989_v45  ;;  %v4121_v36 = vadd.f32 %v4118_v28, %v5987_v39 }
 0x734   : > { %v4329_v42 = vpop.f32.mrb[42].mxu0 }
 0x735   : > { %v4139_v37 = vcombine.high %v4137_v33, %v4137_v33  ;;  %v4153_v38 = vrot.slane %v4137_v33, %v5989_v45  ;;  %v4160_v40 = vrot.slane %v4138_v34, %v5989_v45  ;;  %v4168_v41 = vcombine.high %v4146_v35, %v4146_v35  ;;  %4180 = vst.msk [vmem:[%s6001_s14 + $0xc] sm:$0x1] %vm768_vm7, %v4146_v35  ;;  %v4399_v43 = vpop.f32.mrb[42].mxu1  ;;  %v5409_v47 = vpop.f32.mrb[43].mxu0 }
 0x736   : > { %v4189_v44 = vcombine.high %v4121_v36, %v4121_v36  ;;  %v4196_v46 = vrot.slane %v4121_v36, %v5989_v45  ;;  %v5416_v48 = vpop.f32.mrb[43].mxu1  ;;  %5418 = vmatpush3.msk.msra.mxu0 %vm407_vm5, %v4399_v43  ;;  %5423 = vmatpush3.msk.msra.mxu1 %vm407_vm5, %v4329_v42 }
 0x737   : > { %v4167_v49 = vrot.slane %v4139_v37, %v5989_v45  ;;  %v4169_v50 = vcombine.high %v4153_v38, %v4153_v38  ;;  %v4170_v51 = vcombine.high %v4160_v40, %v4160_v40  ;;  %4181 = vst.msk [vmem:[%s6001_s14 + $0x1c] sm:$0x1] %vm768_vm7, %v4160_v40  ;;  %4182 = vst.msk [vmem:[%s6001_s14 + $0x2c] sm:$0x1] %vm768_vm7, %v4168_v41  ;;  %5427 = vmatprep.subr.mxu0 %v5701_v1 }
 0x738   : > { %4184 = vst.msk [vmem:[%s6001_s14 + $0x4c] sm:$0x1] %vm768_vm7, %v4153_v38  ;;  %5432 = vmatprep.subr.mxu1 %v5701_v1  ;;  %v4203_v52 = vrot.slane %v4189_v44, %v5989_v45  ;;  %v4204_v53 = vcombine.high %v4196_v46, %v4196_v46  ;;  %v4212_v54 = vrot.slane %v4196_v46, %v5989_v45 }
 0x739   : > { %5420 = vmatmul.mubr.msk.f32.vlgmr.msra.gmra.mrb[44].mxu0 %vm403_vm6, %v6464_v2  ;;  %5425 = vmatmul.mubr.msk.f32.vlgmr.msra.gmra.mrb[44].mxu1 %vm403_vm6, %v6454_v59  ;;  %v4171_v55 = vcombine.high %v4167_v49, %v4167_v49  ;;  %4183 = vst.msk [vmem:[%s6001_s14 + $0x3c] sm:$0x1] %vm768_vm7, %v4170_v51  ;;  %4185 = vst.msk [vmem:[%s6001_s14 + $0x5c] sm:$0x1] %vm768_vm7, %v4167_v49 }
 0x73a   : > { %4186 = vst.msk [vmem:[%s6001_s14 + $0x6c] sm:$0x1] %vm768_vm7, %v4169_v50  ;;  %5428 = vmatpush3.msk.msra.mxu0 %vm407_vm5, %v4399_v43  ;;  %5433 = vmatpush3.msk.msra.mxu1 %vm407_vm5, %v4329_v42  ;;  %v4205_v56 = vcombine.high %v4203_v52, %v4203_v52  ;;  %v4219_v57 = vrot.slane %v4203_v52, %v5989_v45  ;;  %4246 = vst.msk [vmem:[%s6001_s14 + $0xd] sm:$0x1] %vm768_vm7, %v4212_v54 }
 0x73b   : > { %v4226_v58 = vrot.slane %v4204_v53, %v5989_v45  ;;  %v4234_v7 = vcombine.high %v4212_v54, %v4212_v54  ;;  %5429 = vmatprep.mubr.msk.f32.mxu0 %vm5700_vm0, %v5701_v1  ;;  %4187 = vst.msk [vmem:[%s6001_s14 + $0x7c] sm:$0x1] %vm768_vm7, %v4171_v55  ;;  %5434 = vmatprep.mubr.msk.f32.mxu1 %vm5700_vm0, %v5701_v1 }
 0x73c   : > { %v4233_v8 = vrot.slane %v4205_v56, %v5989_v45  ;;  %v4235_v59 = vcombine.high %v4219_v57, %v4219_v57  ;;  %4250 = vst.msk [vmem:[%s6001_s14 + $0x4d] sm:$0x1] %vm768_vm7, %v4219_v57 }
 0x73d   : > { %v4236_v60 = vcombine.high %v4226_v58, %v4226_v58  ;;  %4247 = vst.msk [vmem:[%s6001_s14 + $0x1d] sm:$0x1] %vm768_vm7, %v4226_v58  ;;  %4248 = vst.msk [vmem:[%s6001_s14 + $0x2d] sm:$0x1] %vm768_vm7, %v4234_v7  ;;  %5430 = vmatmul.mubr.msk.f32.vlgmr.msra.gmra.mrb[46].mxu0 %vm403_vm6, %v6500_v11  ;;  %5435 = vmatmul.mubr.msk.f32.vlgmr.msra.gmra.mrb[46].mxu1 %vm403_vm6, %v6507_v18 }
 0x73e   : > { %v4237_v61 = vcombine.high %v4233_v8, %v4233_v8  ;;  %4251 = vst.msk [vmem:[%s6001_s14 + $0x5d] sm:$0x1] %vm768_vm7, %v4233_v8  ;;  %4252 = vst.msk [vmem:[%s6001_s14 + $0x6d] sm:$0x1] %vm768_vm7, %v4235_v59 }
 0x73f   : > { %4249 = vst.msk [vmem:[%s6001_s14 + $0x3d] sm:$0x1] %vm768_vm7, %v4236_v60 }
 0x740   : > { %4253 = vst.msk [vmem:[%s6001_s14 + $0x7d] sm:$0x1] %vm768_vm7, %v4237_v61 }
 0x80c   : > { %v4472_v1 = vpop.f32.mrb[44].mxu0  ;;  %v4545_v62 = vpop.f32.mrb[44].mxu1 }
 0x80d   : > { %v4546_v10 = vadd.f32 %v4545_v62, %v4472_v1  ;;  %v5421_v63 = vpop.f32.mrb[45].mxu0  ;;  %v5426_v2 = vpop.f32.mrb[45].mxu1 }
 0x80f   : > { %v4549_v3 = vadd.f32 %v4546_v10, %v5987_v39 }
 0x810   : > { %v4616_v4 = vpop.f32.mrb[46].mxu0  ;;  %v4686_v6 = vpop.f32.mrb[46].mxu1 }
 0x811   : > { %v4692_v12 = vcombine.high %v4549_v3, %v4549_v3  ;;  %v4699_v13 = vrot.slane %v4549_v3, %v5989_v45  ;;  %v4687_v21 = vadd.f32 %v4686_v6, %v4616_v4  ;;  %v5431_v22 = vpop.f32.mrb[47].mxu0  ;;  %v5436_v14 = vpop.f32.mrb[47].mxu1 }
 0x813   : > { %v4706_v15 = vrot.slane %v4692_v12, %v5989_v45  ;;  %v4707_v16 = vcombine.high %v4699_v13, %v4699_v13  ;;  %v4715_v17 = vrot.slane %v4699_v13, %v5989_v45  ;;  %v4690_v11 = vadd.f32 %v4687_v21, %v5987_v39 }
 0x815   : > { %v4708_v18 = vcombine.high %v4706_v15, %v4706_v15  ;;  %v4722_v19 = vrot.slane %v4706_v15, %v5989_v45  ;;  %v4729_v29 = vrot.slane %v4707_v16, %v5989_v45  ;;  %v4737_v0 = vcombine.high %v4715_v17, %v4715_v17  ;;  %4749 = vst.msk [vmem:[%s6001_s14 + $0xe] sm:$0x1] %vm768_vm7, %v4715_v17 }
 0x816   : > { %v4758_v5 = vcombine.high %v4690_v11, %v4690_v11  ;;  %v4765_v9 = vrot.slane %v4690_v11, %v5989_v45 }
 0x817   : > { %v4736_v20 = vrot.slane %v4708_v18, %v5989_v45  ;;  %v4738_v30 = vcombine.high %v4722_v19, %v4722_v19  ;;  %v4739_v23 = vcombine.high %v4729_v29, %v4729_v29  ;;  %4750 = vst.msk [vmem:[%s6001_s14 + $0x1e] sm:$0x1] %vm768_vm7, %v4729_v29  ;;  %4751 = vst.msk [vmem:[%s6001_s14 + $0x2e] sm:$0x1] %vm768_vm7, %v4737_v0 }
 0x818   : > { %4753 = vst.msk [vmem:[%s6001_s14 + $0x4e] sm:$0x1] %vm768_vm7, %v4722_v19  ;;  %v4772_v39 = vrot.slane %v4758_v5, %v5989_v45  ;;  %v4773_v24 = vcombine.high %v4765_v9, %v4765_v9  ;;  %v4781_v25 = vrot.slane %v4765_v9, %v5989_v45 }
 0x819   : > { %v4740_v26 = vcombine.high %v4736_v20, %v4736_v20  ;;  %4752 = vst.msk [vmem:[%s6001_s14 + $0x3e] sm:$0x1] %vm768_vm7, %v4739_v23  ;;  %4754 = vst.msk [vmem:[%s6001_s14 + $0x5e] sm:$0x1] %vm768_vm7, %v4736_v20 }
 0x81a   : > { %4755 = vst.msk [vmem:[%s6001_s14 + $0x6e] sm:$0x1] %vm768_vm7, %v4738_v30  ;;  %v4774_v27 = vcombine.high %v4772_v39, %v4772_v39  ;;  %v4788_v28 = vrot.slane %v4772_v39, %v5989_v45  ;;  %v4795_v31 = vrot.slane %v4773_v24, %v5989_v45  ;;  %v4803_v32 = vcombine.high %v4781_v25, %v4781_v25 }
 0x81b   : > { %4815 = vst.msk [vmem:[%s6001_s14 + $0xf] sm:$0x1] %vm768_vm7, %v4781_v25  ;;  %4756 = vst.msk [vmem:[%s6001_s14 + $0x7e] sm:$0x1] %vm768_vm7, %v4740_v26 }
 0x81c   : > { %v4802_v33 = vrot.slane %v4774_v27, %v5989_v45  ;;  %v4804_v34 = vcombine.high %v4788_v28, %v4788_v28  ;;  %v4805_v35 = vcombine.high %v4795_v31, %v4795_v31  ;;  %4816 = vst.msk [vmem:[%s6001_s14 + $0x1f] sm:$0x1] %vm768_vm7, %v4795_v31  ;;  %4817 = vst.msk [vmem:[%s6001_s14 + $0x2f] sm:$0x1] %vm768_vm7, %v4803_v32 }
 0x81d   : > { %4819 = vst.msk [vmem:[%s6001_s14 + $0x4f] sm:$0x1] %vm768_vm7, %v4788_v28 }
 0x81e   : > { %v4806_v36 = vcombine.high %v4802_v33, %v4802_v33  ;;  %4818 = vst.msk [vmem:[%s6001_s14 + $0x3f] sm:$0x1] %vm768_vm7, %v4805_v35  ;;  %4820 = vst.msk [vmem:[%s6001_s14 + $0x5f] sm:$0x1] %vm768_vm7, %v4802_v33 }
 0x81f   : > { %4821 = vst.msk [vmem:[%s6001_s14 + $0x6f] sm:$0x1] %vm768_vm7, %v4804_v34 }
 0x820   : > { %4822 = vst.msk [vmem:[%s6001_s14 + $0x7f] sm:$0x1] %vm768_vm7, %v4806_v36 }
 0x821   : > { %s5048_s28 = sshll.u32 %s5677_s18, 1  ;;  %s5049_s27 = sshll.u32 %s5681_s19, 5 }
 0x822   : > { %s4836_s6 = sadd.s32 %s5049_s27, %s5048_s28  ;;  %s4855_s13 = sshll.u32 %s6001_s14, 4  ;;  %s4856_s13 = int_to_ptr.vmem [resolvable:$true] %s4855_s13 }
 0x823   : > { %s5050_s24 = sshll.u32 %s4836_s6, 7  ;;  %s5704_s26 = smov 256  }
 0x824   : > { %s4838_s29 = scalar_lea.hbm %s6699_s4, %s5050_s24  ;;  %p6710_p8 = scmp.ne.s32.totalorder %s6707_s5, 0 }
 0x825   : > { %s5705_s9 = smov 512   ;;  %s5706_s11 = smov 2  }
 0x826   : > { %5487 = sst [smem:[#allocation7]] (%p6710_p8), %s5704_s26  ;;  %s5707_s18 = smov 128  }
 0x827   : > { %5488 = sst [smem:[#allocation7 + $0x1]] (%p6710_p8), %s5705_s9  ;;  %s5708_s19 = smov 8  }
 0x828   : > { %5489 = sst [smem:[#allocation7 + $0x2]] (%p6710_p8), %s5706_s11  ;;  %s5709_s14 = smov [#allocation6]  }
 0x829   : > { %5490 = sst [smem:[#allocation7 + $0x3]] (%p6710_p8), %s5707_s18  ;;  %s5710_s12 = smov 0  }
 0x82a   : > { %5491 = sst [smem:[#allocation7 + $0x4]] (%p6710_p8), %s5707_s18 }
 0x82b   : > { %5492 = sst [smem:[#allocation7 + $0x5]] (%p6710_p8), %s5708_s19 }
 0x82c   : > { %5493 = dma.general (%p6710_p8), %s4856_s13, 2048, %s4838_s29, %s4824_s30, %s5709_s14, [#allocation7], %s5710_s12, 0  }
 0x82d PF: > { %p5504_p9 = scmp.ge.s32.totalorder %s5693_s22, 2  ;;  %s4883_s23 = sand.u32 1, %s5665_s15  }
 0x82e   : > { %p6711_p12 = scmp.ne.s32.totalorder %s6708_s8, 0  ;;  %s4884_s28 = scalar_lea.sflag [#allocation4], %s4883_s23 }
 0x830   : > { %p5500_p0 = pnand %p5504_p9, %p6711_p12 }
 0x832   : > { %5660 = dma.done.wait (!%p5500_p0), %s4884_s28, 2048  }
 0x833   : > { %5662 = vsyncadd (!%p5500_p0), %s4884_s28, 4294965248  ;;  %s20_s22 = sadd.s32 1, %s5693_s22   ;;  %s6712_s5 = sld [smem:[#allocation10_spill]] }
 0x834   : > { %p17_p11 = scmp.ge.s32.totalorder %s20_s22, 6   ;;  %s6713_s30 = sld [smem:[#allocation11_spill]] }
 0x835   : > { %s6714_s15 = smov %s5669_s16  ;;  %s6715_s16 = smov %s5673_s17 }
 0x836   : > { %s6716_s17 = smov %s5814_s10  ;;  %s6717_s18 = smov %s5685_s20 }
 0x837   : > { %s6718_s19 = smov %s5689_s21  ;;  %19 = sbr.rel (!%p17_p11) target bundleno = 7 (0x7), region = 86 }
 0x839   : > { %s6719_s20 = smov %s6712_s5 }
 0x83a   : > { %s6720_s21 = smov %s6713_s30 }
 0x83e   :  { %4889 = vsyncpa [#allocation3], 1 }
 0x83f   :  { %4891 = vsyncpa [#allocation3 + $0x1], 1 }
 0x840   :  { %4892 = vsyncpa [#allocation4], 1 }
 0x841   :  { %4894 = vsyncpa [#allocation4 + $0x1], 1 }

</bundles_post_ra>
